<compile_context>
chip_gen: v7x
topology: tpu7x:2x2x1
jax: 0.10.0
libtpu: 0.0.40
codegen_flags: <defaults>
</compile_context>

<pallas_src>
import functools
import math

import numpy as np
import jax
import jax.numpy as jnp
from jax import lax
from jax.experimental import pallas as pl
from jax.experimental.pallas import tpu as pltpu

NEG_SLOPE = 0.1  # LeakyReLU(0.1)


def _leaky(x):
    return jnp.where(x > 0, x, NEG_SLOPE * x)


def _round_up(x, m):
    return ((x + m - 1) // m) * m


# ---------------------------------------------------------------------------
# Fused kernel: one (batch, time-tile) grid step of the whole decoder block
# ---------------------------------------------------------------------------
def _decoder_kernel(x_ref, rmat_ref, w0_ref, b0_ref, w1_ref, b1_ref,
                    w2_ref, b2_ref, o_ref, xu_ref, col0_ref, h_ref, *buf_refs,
                    dilations, halo_pads, off0):
    """Refs:
      x_ref   : (Cin, Win)            raw-input window (pre-upsample, padded)
      rmat_ref: (Win, Win*stride)     constant 0/1 nearest-neighbour upsample matrix
      w0_ref  : (Cout, K0*Cin)        folded in_conv weight    b0_ref: (Cout, 1)
      w1_ref  : (n_res, KR, Cout, Cout) per-tap dilated weights b1_ref: (n_res, Cout, 1)
      w2_ref  : (n_res, Cout, Cout)   1x1 conv weights          b2_ref: (n_res, Cout, 1)
      o_ref   : (Cout, TL)            output tile
      xu_ref  : (Cin, Win*stride)     upsampled-input scratch
      col0_ref: (K0*Cin, TL)          im2col scratch (in_conv only)
      h_ref   : (Cout, TL) f32        residual stream (carried in f32)
      buf_refs[i]: (Cout, hpad_i+TL)  persistent per-layer causal-history buffer
                                      (live history = last halo cols of the
                                      128-aligned hpad_i head).
    """
    t = pl.program_id(1)
    cin = x_ref.shape[0]
    cout, tl = o_ref.shape
    k0 = w0_ref.shape[1] // cin
    kr = w1_ref.shape[1]
    cdtype = xu_ref.dtype

    # ---- nearest-neighbour upsample (exact 0/1 matmul; fine for small Cin) --
    xu_ref[...] = jnp.dot(x_ref[...], rmat_ref[...],
                          preferred_element_type=jnp.float32).astype(cdtype)

    # ---- in_conv ('same' conv on the upsampled signal): K0*Cin folded -------
    for k in range(k0):
        col0_ref[k * cin:(k + 1) * cin, :] = xu_ref[:, off0 + k:off0 + k + tl]
    h0 = jnp.dot(w0_ref[...], col0_ref[...],
                 preferred_element_type=jnp.float32) + b0_ref[...]
    h_ref[...] = _leaky(h0)                                      # (Cout, TL) f32

    # ---- residual stack: activations resident in VMEM, history carried ------
    for i, d in enumerate(dilations):
        halo = d * (kr - 1)
        hpad = halo_pads[i]                 # round_up(halo, 128) -> aligned stores
        buf = buf_refs[i]

        @pl.when(t == 0)
        def _zero_history():                # causal zero pad at sequence start
            buf[:, :hpad] = jnp.zeros((cout, hpad), cdtype)

        # aligned, unmasked append of this layer's input tile
        buf[:, hpad:hpad + tl] = h_ref[...].astype(cdtype)

        # dilated conv: per-tap matmuls accumulated in f32 (no im2col scratch)
        acc = jnp.dot(w1_ref[i, 0], buf[:, hpad - halo:hpad - halo + tl],
                      preferred_element_type=jnp.float32)
        for k in range(1, kr):
            s = hpad - halo + k * d
            acc = acc + jnp.dot(w1_ref[i, k], buf[:, s:s + tl],
                                preferred_element_type=jnp.float32)
        z = _leaky(acc + b1_ref[i]).astype(cdtype)
        z = jnp.dot(w2_ref[i], z, preferred_element_type=jnp.float32) + b2_ref[i]
        # dropout(p=0.0) is the identity; residual add + block activation in f32
        h_ref[...] = _leaky(h_ref[...] + z)

        # carry the aligned history slab to the next tile.  Non-overlapping and
        # correct because hpad <= TL and halo <= TL (asserted in the wrapper).
        buf[:, :hpad] = buf[:, tl:tl + hpad]

    o_ref[...] = h_ref[...].astype(o_ref.dtype)


# ---------------------------------------------------------------------------
# Parameter preparation (fold / stack / cast ONCE, not per forward call)
# ---------------------------------------------------------------------------
def prepare_decoder_params(params, stride, dilations, dtype=jnp.float32):
    """Use dtype=jnp.bfloat16 for large-channel configs (halves weight VMEM on v7x)."""
    w0, b0 = params["in_conv"]                       # (Cout, Cin, K0), (Cout,)
    cout, cin, k0 = w0.shape
    # im2col row order is k*Cin + c  ->  fold (Cout, Cin, K0) -> (Cout, K0*Cin)
    w0f = jnp.transpose(w0, (0, 2, 1)).reshape(cout, k0 * cin)
    w1s, b1s, w2s, b2s = [], [], [], []
    for (w1, b1, w2, b2) in params["layers"]:
        w1s.append(jnp.transpose(w1, (2, 0, 1)))     # (KR, Cout, Cout) per-tap
        b1s.append(b1.reshape(cout, 1))
        w2s.append(w2[:, :, 0])
        b2s.append(b2.reshape(cout, 1))
    return dict(
        stride=stride, dilations=tuple(dilations), dtype=dtype, k0=k0,
        w0=w0f.astype(dtype), b0=b0.reshape(cout, 1).astype(jnp.float32),
        w1=jnp.stack(w1s).astype(dtype),             # (n_res, KR, Cout, Cout)
        b1=jnp.stack(b1s).astype(jnp.float32),
        w2=jnp.stack(w2s).astype(dtype),             # (n_res, Cout, Cout)
        b2=jnp.stack(b2s).astype(jnp.float32),
    )


def _auto_tiling():
    """Per-chip defaults: v5e/v6e (128 MiB VMEM) -> big tiles; v7x (64 MiB/TC)
    -> smaller tiles and a tighter scoped-VMEM cap."""
    vmem_cap = 128 * 1024 * 1024
    try:
        vmem_cap = int(pltpu.get_tpu_info().vmem_capacity_bytes)
    except Exception:
        pass
    if vmem_cap >= 100 * 1024 * 1024:                 # v5e / v6e
        return 1024, min(vmem_cap - 28 * 1024 * 1024, 100 * 1024 * 1024)
    # v7x-class: 64 MiB per TensorCore
    return 256, min(max(vmem_cap - 12 * 1024 * 1024, 32 * 1024 * 1024),
                    56 * 1024 * 1024)


# ---------------------------------------------------------------------------
# Wrapper: tiling / windowing glue, single fused pallas_call
# ---------------------------------------------------------------------------
def causal_decoder_block(x, prepared, *, tile_l=None, vmem_limit_bytes=None):
    """x: (B, Cin, L) -> (B, Cout, L*stride)."""
    p = prepared
    stride, dilations, cdtype = p["stride"], p["dilations"], p["dtype"]
    w0, b0, w1, b1, w2, b2 = p["w0"], p["b0"], p["w1"], p["b1"], p["w2"], p["b2"]
    B, Cin, L = x.shape
    Cout = w0.shape[0]
    K0 = w0.shape[1] // Cin
    KR = w1.shape[1]
    n_res = len(dilations)
    L_out = L * stride

    auto_tl, auto_vmem = _auto_tiling()
    align = 128 * stride // math.gcd(128, stride)     # lane-dense + phase-invariant
    if tile_l is None:
        tile_l = max(align, (auto_tl // align) * align)
    if vmem_limit_bytes is None:
        vmem_limit_bytes = auto_vmem

    # ---- time tiling (lane-dense output blocks) -----------------------------
    if L_out <= tile_l:
        TL = _round_up(L_out, align)
    else:
        assert tile_l % align == 0, f"tile_l must be a multiple of {align}"
        TL = tile_l
    TLin = TL // stride
    T = -(-L_out // TL)

    halos = [d * (KR - 1) for d in dilations]
    max_halo = max(halos) if halos else 0
    assert TL >= max_halo, (
        f"time tile ({TL}) must be >= max causal history ({max_halo}); "
        "increase tile_l so one previous tile covers the dilated receptive field")
    halo_pads = tuple(_round_up(h, 128) for h in halos)

    # ---- pre-upsample padding so every raw-input window is in range ---------
    pad_l = (K0 - 1) // 2
    pad_r = (K0 - 1) - pad_l
    P = -(-pad_l // stride)                          # left pad (pre-upsample cols)
    off0 = P * stride - pad_l                        # first needed upsampled offset
    E = -(-(off0 + K0 - 1) // stride)                # right look-ahead (pre-upsample)
    Win = TLin + E
    Lp = max(P + L + -(-pad_r // stride), T * TLin + E)
    x_pad = jnp.pad(x, ((0, 0), (0, 0), (P, Lp - P - L)))

    # per-tile overlapping windows of the *raw* input only (tiny vs. L*stride)
    idx = jnp.arange(T)[:, None] * TLin + jnp.arange(Win)[None, :]        # (T, Win)
    x_win = jnp.transpose(x_pad[:, :, idx], (0, 2, 1, 3)).astype(cdtype)  # (B,T,Cin,Win)

    # constant nearest-neighbour upsample matrix
    rows = jnp.arange(Win)[:, None]
    cols = jnp.arange(Win * stride)[None, :]
    rmat = (cols // stride == rows).astype(cdtype)                        # (Win, Win*stride)

    kernel = functools.partial(_decoder_kernel, dilations=dilations,
                               halo_pads=halo_pads, off0=off0)

    scratch = [pltpu.VMEM((Cin, Win * stride), cdtype),   # upsampled input
               pltpu.VMEM((K0 * Cin, TL), cdtype),        # im2col (in_conv only)
               pltpu.VMEM((Cout, TL), jnp.float32)]       # residual stream (f32)
    scratch += [pltpu.VMEM((Cout, hp + TL), cdtype)       # carried causal history
                for hp in halo_pads]

    # constants: whole-array, VMEM-resident, single-buffered (not pipelined)
    const_spec = pl.BlockSpec(memory_space=pltpu.MemorySpace.VMEM)

    itemsize = jnp.dtype(cdtype).itemsize
    flops = 2 * B * T * (Cin * Win * Win * stride
                         + Cout * K0 * Cin * TL
                         + n_res * (KR + 1) * Cout * Cout * TL)
    bytes_accessed = (x_win.size * itemsize
                      + B * Cout * L_out * jnp.dtype(x.dtype).itemsize
                      + (w0.size + w1.size + w2.size + rmat.size) * itemsize
                      + (b0.size + b1.size + b2.size) * 4)

    out = pl.pallas_call(
        kernel,
        out_shape=jax.ShapeDtypeStruct((B, Cout, L_out), x.dtype),
        grid=(B, T),
        in_specs=[
            pl.BlockSpec((None, None, Cin, Win), lambda b, t: (b, t, 0, 0)),
            const_spec,               # rmat
            const_spec, const_spec,   # w0, b0
            const_spec, const_spec,   # w1, b1
            const_spec, const_spec,   # w2, b2
        ],
        out_specs=pl.BlockSpec((None, Cout, TL), lambda b, t: (b, 0, t)),
        scratch_shapes=scratch,
        compiler_params=pltpu.CompilerParams(
            dimension_semantics=("parallel", "arbitrary"),
            vmem_limit_bytes=int(vmem_limit_bytes)),
        cost_estimate=pl.CostEstimate(flops=int(flops), transcendentals=0,
                                      bytes_accessed=int(bytes_accessed)),
    )(x_win, rmat, w0, b0, w1, b1, w2, b2)
    return out


# ---------------------------------------------------------------------------
# Pure-JAX reference (mirrors the PyTorch module) for correctness check
# ---------------------------------------------------------------------------
def _ref_conv1d(x, w, b, dilation, pad_l, pad_r):
    out = lax.conv_general_dilated(
        x, w, window_strides=(1,), padding=[(pad_l, pad_r)],
        rhs_dilation=(dilation,), dimension_numbers=("NCH", "OIH", "NCH"))
    return out + b[None, :, None]


def reference_forward(x, params, stride, dilations):
    w0, b0 = params["in_conv"]
    K0 = w0.shape[2]
    x = jnp.repeat(x, stride, axis=-1)
    x = _leaky(_ref_conv1d(x, w0, b0, 1, (K0 - 1) // 2, (K0 - 1) - (K0 - 1) // 2))
    for (w1, b1, w2, b2), d in zip(params["layers"], dilations):
        K = w1.shape[2]
        h = _leaky(_ref_conv1d(x, w1, b1, d, d * (K - 1), 0))
        h = _ref_conv1d(h, w2, b2, 1, 0, 0)
        x = _leaky(x + h)
    return x


# ---------------------------------------------------------------------------
def make_params(key, in_channels, out_channels, stride, n_layers):
    k_in, *k_layers = jax.random.split(key, 1 + 2 * (n_layers - 1))
    K0 = 2 * stride + 1
    params = {
        "in_conv": (
            0.1 * jax.random.normal(k_in, (out_channels, in_channels, K0), jnp.float32),
            0.05 * jax.random.normal(jax.random.fold_in(k_in, 1), (out_channels,), jnp.float32),
        ),
        "layers": [],
    }
    for i in range(n_layers - 1):
        ka, kb = k_layers[2 * i], k_layers[2 * i + 1]
        w1 = 0.1 * jax.random.normal(ka, (out_channels, out_channels, 7), jnp.float32)
        b1 = 0.05 * jax.random.normal(jax.random.fold_in(ka, 1), (out_channels,), jnp.float32)
        w2 = 0.1 * jax.random.normal(kb, (out_channels, out_channels, 1), jnp.float32)
        b2 = 0.05 * jax.random.normal(jax.random.fold_in(kb, 1), (out_channels,), jnp.float32)
        params["layers"].append((w1, b1, w2, b2))
    return params


if __name__ == "__main__":
    B, Cin, Cout, L, stride, n_layers = 2, 4, 8, 256, 2, 4
    dilations = [3 ** i for i in range(n_layers - 1)]   # [1, 3, 9]

    key = jax.random.PRNGKey(0)
    kx, kp = jax.random.split(key)
    x = jax.random.normal(kx, (B, Cin, L), jnp.float32)
    params = make_params(kp, Cin, Cout, stride, n_layers)

    ref = jax.block_until_ready(reference_forward(x, params, stride, dilations))

    # f32 path: 4 time-tiles of 128 -> exercises the carried causal history/halo
    prep32 = prepare_decoder_params(params, stride, dilations, jnp.float32)
    out32 = jax.block_until_ready(causal_decoder_block(x, prep32, tile_l=128))
    assert out32.shape == (B, Cout, L * stride), out32.shape
    np.testing.assert_allclose(np.asarray(out32), np.asarray(ref), rtol=1e-3, atol=1e-4)

    # bf16 weights/activations with f32 accumulation + f32 residual carry
    prep16 = prepare_decoder_params(params, stride, dilations, jnp.bfloat16)
    out16 = jax.block_until_ready(
        causal_decoder_block(x.astype(jnp.bfloat16), prep16, tile_l=128))
    np.testing.assert_allclose(np.asarray(out16.astype(jnp.float32)), np.asarray(ref),
                               rtol=5e-2, atol=5e-2)

    print("KERNEL_OK")
</pallas_src>

<mosaic_0001>
module attributes {stable_mosaic.version = 11 : i64} {
  func.func @_decoder_kernel(%arg0: i32, %arg1: i32, %arg2: memref<1x1x4x66xf32, #tpu.memory_space<vmem>>, %arg3: memref<66x132xf32, #tpu.memory_space<vmem>>, %arg4: memref<8x20xf32, #tpu.memory_space<vmem>>, %arg5: memref<8x1xf32, #tpu.memory_space<vmem>>, %arg6: memref<3x7x8x8xf32, #tpu.memory_space<vmem>>, %arg7: memref<3x8x1xf32, #tpu.memory_space<vmem>>, %arg8: memref<3x8x8xf32, #tpu.memory_space<vmem>>, %arg9: memref<3x8x1xf32, #tpu.memory_space<vmem>>, %arg10: memref<1x8x128xf32, #tpu.memory_space<vmem>>, %arg11: memref<4x132xf32, #tpu.memory_space<vmem>>, %arg12: memref<20x128xf32, #tpu.memory_space<vmem>>, %arg13: memref<8x128xf32, #tpu.memory_space<vmem>>, %arg14: memref<8x256xf32, #tpu.memory_space<vmem>>, %arg15: memref<8x256xf32, #tpu.memory_space<vmem>>, %arg16: memref<8x256xf32, #tpu.memory_space<vmem>>) attributes {dimension_semantics = [#tpu.dimension_semantics<parallel>, #tpu.dimension_semantics<arbitrary>], iteration_bounds = array<i64: 2, 4>, scalar_prefetch = 0 : i64, scratch_operands = 6 : i64, tpu.core_type = #tpu.core_type<tc>, window_params = [{transform_indices = @transform_0, window_bounds = array<i64: 1, 1, 4, 66>}, {pipeline_mode = #tpu.pipeline_mode<synchronous>, transform_indices = @transform_1, window_bounds = array<i64: 66, 132>}, {pipeline_mode = #tpu.pipeline_mode<synchronous>, transform_indices = @transform_2, window_bounds = array<i64: 8, 20>}, {pipeline_mode = #tpu.pipeline_mode<synchronous>, transform_indices = @transform_3, window_bounds = array<i64: 8, 1>}, {pipeline_mode = #tpu.pipeline_mode<synchronous>, transform_indices = @transform_4, window_bounds = array<i64: 3, 7, 8, 8>}, {pipeline_mode = #tpu.pipeline_mode<synchronous>, transform_indices = @transform_5, window_bounds = array<i64: 3, 8, 1>}, {pipeline_mode = #tpu.pipeline_mode<synchronous>, transform_indices = @transform_6, window_bounds = array<i64: 3, 8, 8>}, {pipeline_mode = #tpu.pipeline_mode<synchronous>, transform_indices = @transform_7, window_bounds = array<i64: 3, 8, 1>}, {transform_indices = @transform_8, window_bounds = array<i64: 1, 8, 128>}]} {
    %c0 = arith.constant 0 : index
    %c0_0 = arith.constant 0 : index
    %c0_1 = arith.constant 0 : index
    %c0_2 = arith.constant 0 : index
    %0 = vector.load %arg2[%c0, %c0_0, %c0_1, %c0_2] : memref<1x1x4x66xf32, #tpu.memory_space<vmem>>, vector<1x1x4x66xf32>
    %1 = vector.shape_cast %0 : vector<1x1x4x66xf32> to vector<4x66xf32>
    %c0_3 = arith.constant 0 : index
    %c0_4 = arith.constant 0 : index
    %2 = vector.load %arg3[%c0_3, %c0_4] : memref<66x132xf32, #tpu.memory_space<vmem>>, vector<66x132xf32>
    %cst = arith.constant dense<0.000000e+00> : vector<4x132xf32>
    %3 = tpu.matmul %1, %2, %cst {dimension_numbers = #tpu.dot_dimension_numbers<[1], [0], [0], [1], [0, 0, 1, 1], [], []>} : vector<4x66xf32>, vector<66x132xf32>, vector<4x132xf32> -> vector<4x132xf32>
    %c0_5 = arith.constant 0 : index
    %c0_6 = arith.constant 0 : index
    %4 = vector.load %arg11[%c0_5, %c0_6] : memref<4x132xf32, #tpu.memory_space<vmem>>, vector<4x132xf32>
    tpu.vector_store %arg11[%c0_5, %c0_6], %3 {strides = array<i32>} : memref<4x132xf32, #tpu.memory_space<vmem>>, vector<4x132xf32>,
    %c0_7 = arith.constant 0 : index
    %c0_8 = arith.constant 0 : index
    %5 = vector.load %arg11[%c0_7, %c0_8] : memref<4x132xf32, #tpu.memory_space<vmem>>, vector<4x128xf32>
    %c0_9 = arith.constant 0 : index
    %c0_10 = arith.constant 0 : index
    %6 = vector.load %arg12[%c0_9, %c0_10] : memref<20x128xf32, #tpu.memory_space<vmem>>, vector<4x128xf32>
    tpu.vector_store %arg12[%c0_9, %c0_10], %5 {strides = array<i32>} : memref<20x128xf32, #tpu.memory_space<vmem>>, vector<4x128xf32>,
    %c0_11 = arith.constant 0 : index
    %c1 = arith.constant 1 : index
    %7 = vector.load %arg11[%c0_11, %c1] : memref<4x132xf32, #tpu.memory_space<vmem>>, vector<4x128xf32>
    %c4 = arith.constant 4 : index
    %c0_12 = arith.constant 0 : index
    %8 = vector.load %arg12[%c4, %c0_12] : memref<20x128xf32, #tpu.memory_space<vmem>>, vector<4x128xf32>
    tpu.vector_store %arg12[%c4, %c0_12], %7 {strides = array<i32>} : memref<20x128xf32, #tpu.memory_space<vmem>>, vector<4x128xf32>,
    %c0_13 = arith.constant 0 : index
    %c2 = arith.constant 2 : index
    %9 = vector.load %arg11[%c0_13, %c2] : memref<4x132xf32, #tpu.memory_space<vmem>>, vector<4x128xf32>
    %c8 = arith.constant 8 : index
    %c0_14 = arith.constant 0 : index
    %10 = vector.load %arg12[%c8, %c0_14] : memref<20x128xf32, #tpu.memory_space<vmem>>, vector<4x128xf32>
    tpu.vector_store %arg12[%c8, %c0_14], %9 {strides = array<i32>} : memref<20x128xf32, #tpu.memory_space<vmem>>, vector<4x128xf32>,
    %c0_15 = arith.constant 0 : index
    %c3 = arith.constant 3 : index
    %11 = vector.load %arg11[%c0_15, %c3] : memref<4x132xf32, #tpu.memory_space<vmem>>, vector<4x128xf32>
    %c12 = arith.constant 12 : index
    %c0_16 = arith.constant 0 : index
    %12 = vector.load %arg12[%c12, %c0_16] : memref<20x128xf32, #tpu.memory_space<vmem>>, vector<4x128xf32>
    tpu.vector_store %arg12[%c12, %c0_16], %11 {strides = array<i32>} : memref<20x128xf32, #tpu.memory_space<vmem>>, vector<4x128xf32>,
    %c0_17 = arith.constant 0 : index
    %c4_18 = arith.constant 4 : index
    %13 = vector.load %arg11[%c0_17, %c4_18] : memref<4x132xf32, #tpu.memory_space<vmem>>, vector<4x128xf32>
    %c16 = arith.constant 16 : index
    %c0_19 = arith.constant 0 : index
    %14 = vector.load %arg12[%c16, %c0_19] : memref<20x128xf32, #tpu.memory_space<vmem>>, vector<4x128xf32>
    tpu.vector_store %arg12[%c16, %c0_19], %13 {strides = array<i32>} : memref<20x128xf32, #tpu.memory_space<vmem>>, vector<4x128xf32>,
    %c0_20 = arith.constant 0 : index
    %c0_21 = arith.constant 0 : index
    %15 = vector.load %arg4[%c0_20, %c0_21] : memref<8x20xf32, #tpu.memory_space<vmem>>, vector<8x20xf32>
    %c0_22 = arith.constant 0 : index
    %c0_23 = arith.constant 0 : index
    %16 = vector.load %arg12[%c0_22, %c0_23] : memref<20x128xf32, #tpu.memory_space<vmem>>, vector<20x128xf32>
    %cst_24 = arith.constant dense<0.000000e+00> : vector<8x128xf32>
    %17 = tpu.matmul %15, %16, %cst_24 {dimension_numbers = #tpu.dot_dimension_numbers<[1], [0], [0], [1], [0, 0, 1, 1], [], []>} : vector<8x20xf32>, vector<20x128xf32>, vector<8x128xf32> -> vector<8x128xf32>
    %c0_25 = arith.constant 0 : index
    %c0_26 = arith.constant 0 : index
    %18 = vector.load %arg5[%c0_25, %c0_26] : memref<8x1xf32, #tpu.memory_space<vmem>>, vector<8x1xf32>
    %19 = vector.broadcast %18 : vector<8x1xf32> to vector<8x128xf32>
    %20 = arith.addf %17, %19 : vector<8x128xf32>
    %cst_27 = arith.constant 0.000000e+00 : f32
    %21 = vector.broadcast %cst_27 : f32 to vector<8x128xf32>
    %22 = arith.cmpf ogt, %20, %21 : vector<8x128xf32>
    %cst_28 = arith.constant 1.000000e-01 : f32
    %23 = vector.broadcast %cst_28 : f32 to vector<8x128xf32>
    %24 = arith.mulf %23, %20 : vector<8x128xf32>
    %25 = arith.select %22, %20, %24 : vector<8x128xi1>, vector<8x128xf32>
    %c0_29 = arith.constant 0 : index
    %c0_30 = arith.constant 0 : index
    %26 = vector.load %arg13[%c0_29, %c0_30] : memref<8x128xf32, #tpu.memory_space<vmem>>, vector<8x128xf32>
    tpu.vector_store %arg13[%c0_29, %c0_30], %25 {strides = array<i32>} : memref<8x128xf32, #tpu.memory_space<vmem>>, vector<8x128xf32>,
    %c0_i32 = arith.constant 0 : i32
    %27 = arith.cmpi eq, %arg1, %c0_i32 : i32
    %28 = arith.extui %27 : i1 to i32
    %c0_i32_31 = arith.constant 0 : i32
    %29 = arith.cmpi ne, %28, %c0_i32_31 : i32
    scf.if %29 {
      %cst_249 = arith.constant 0.000000e+00 : f32
      %226 = vector.broadcast %cst_249 : f32 to vector<8x128xf32>
      %c0_250 = arith.constant 0 : index
      %c0_251 = arith.constant 0 : index
      %227 = vector.load %arg14[%c0_250, %c0_251] : memref<8x256xf32, #tpu.memory_space<vmem>>, vector<8x128xf32>
      tpu.vector_store %arg14[%c0_250, %c0_251], %226 {strides = array<i32>} : memref<8x256xf32, #tpu.memory_space<vmem>>, vector<8x128xf32>,
    } else {
    }
    %c0_32 = arith.constant 0 : index
    %c0_33 = arith.constant 0 : index
    %30 = vector.load %arg13[%c0_32, %c0_33] : memref<8x128xf32, #tpu.memory_space<vmem>>, vector<8x128xf32>
    %c0_34 = arith.constant 0 : index
    %c128 = arith.constant 128 : index
    %31 = vector.load %arg14[%c0_34, %c128] : memref<8x256xf32, #tpu.memory_space<vmem>>, vector<8x128xf32>
    tpu.vector_store %arg14[%c0_34, %c128], %30 {strides = array<i32>} : memref<8x256xf32, #tpu.memory_space<vmem>>, vector<8x128xf32>,
    %c0_35 = arith.constant 0 : index
    %c0_36 = arith.constant 0 : index
    %c0_37 = arith.constant 0 : index
    %c0_38 = arith.constant 0 : index
    %32 = vector.load %arg6[%c0_35, %c0_36, %c0_37, %c0_38] : memref<3x7x8x8xf32, #tpu.memory_space<vmem>>, vector<1x1x8x8xf32>
    %33 = vector.shape_cast %32 : vector<1x1x8x8xf32> to vector<8x8xf32>
    %c0_39 = arith.constant 0 : index
    %c122 = arith.constant 122 : index
    %34 = vector.load %arg14[%c0_39, %c122] : memref<8x256xf32, #tpu.memory_space<vmem>>, vector<8x128xf32>
    %cst_40 = arith.constant dense<0.000000e+00> : vector<8x128xf32>
    %35 = tpu.matmul %33, %34, %cst_40 {dimension_numbers = #tpu.dot_dimension_numbers<[1], [0], [0], [1], [0, 0, 1, 1], [], []>} : vector<8x8xf32>, vector<8x128xf32>, vector<8x128xf32> -> vector<8x128xf32>
    %c0_41 = arith.constant 0 : index
    %c1_42 = arith.constant 1 : index
    %c0_43 = arith.constant 0 : index
    %c0_44 = arith.constant 0 : index
    %36 = vector.load %arg6[%c0_41, %c1_42, %c0_43, %c0_44] : memref<3x7x8x8xf32, #tpu.memory_space<vmem>>, vector<1x1x8x8xf32>
    %37 = vector.shape_cast %36 : vector<1x1x8x8xf32> to vector<8x8xf32>
    %c0_45 = arith.constant 0 : index
    %c123 = arith.constant 123 : index
    %38 = vector.load %arg14[%c0_45, %c123] : memref<8x256xf32, #tpu.memory_space<vmem>>, vector<8x128xf32>
    %cst_46 = arith.constant dense<0.000000e+00> : vector<8x128xf32>
    %39 = tpu.matmul %37, %38, %cst_46 {dimension_numbers = #tpu.dot_dimension_numbers<[1], [0], [0], [1], [0, 0, 1, 1], [], []>} : vector<8x8xf32>, vector<8x128xf32>, vector<8x128xf32> -> vector<8x128xf32>
    %40 = arith.addf %35, %39 : vector<8x128xf32>
    %c0_47 = arith.constant 0 : index
    %c2_48 = arith.constant 2 : index
    %c0_49 = arith.constant 0 : index
    %c0_50 = arith.constant 0 : index
    %41 = vector.load %arg6[%c0_47, %c2_48, %c0_49, %c0_50] : memref<3x7x8x8xf32, #tpu.memory_space<vmem>>, vector<1x1x8x8xf32>
    %42 = vector.shape_cast %41 : vector<1x1x8x8xf32> to vector<8x8xf32>
    %c0_51 = arith.constant 0 : index
    %c124 = arith.constant 124 : index
    %43 = vector.load %arg14[%c0_51, %c124] : memref<8x256xf32, #tpu.memory_space<vmem>>, vector<8x128xf32>
    %cst_52 = arith.constant dense<0.000000e+00> : vector<8x128xf32>
    %44 = tpu.matmul %42, %43, %cst_52 {dimension_numbers = #tpu.dot_dimension_numbers<[1], [0], [0], [1], [0, 0, 1, 1], [], []>} : vector<8x8xf32>, vector<8x128xf32>, vector<8x128xf32> -> vector<8x128xf32>
    %45 = arith.addf %40, %44 : vector<8x128xf32>
    %c0_53 = arith.constant 0 : index
    %c3_54 = arith.constant 3 : index
    %c0_55 = arith.constant 0 : index
    %c0_56 = arith.constant 0 : index
    %46 = vector.load %arg6[%c0_53, %c3_54, %c0_55, %c0_56] : memref<3x7x8x8xf32, #tpu.memory_space<vmem>>, vector<1x1x8x8xf32>
    %47 = vector.shape_cast %46 : vector<1x1x8x8xf32> to vector<8x8xf32>
    %c0_57 = arith.constant 0 : index
    %c125 = arith.constant 125 : index
    %48 = vector.load %arg14[%c0_57, %c125] : memref<8x256xf32, #tpu.memory_space<vmem>>, vector<8x128xf32>
    %cst_58 = arith.constant dense<0.000000e+00> : vector<8x128xf32>
    %49 = tpu.matmul %47, %48, %cst_58 {dimension_numbers = #tpu.dot_dimension_numbers<[1], [0], [0], [1], [0, 0, 1, 1], [], []>} : vector<8x8xf32>, vector<8x128xf32>, vector<8x128xf32> -> vector<8x128xf32>
    %50 = arith.addf %45, %49 : vector<8x128xf32>
    %c0_59 = arith.constant 0 : index
    %c4_60 = arith.constant 4 : index
    %c0_61 = arith.constant 0 : index
    %c0_62 = arith.constant 0 : index
    %51 = vector.load %arg6[%c0_59, %c4_60, %c0_61, %c0_62] : memref<3x7x8x8xf32, #tpu.memory_space<vmem>>, vector<1x1x8x8xf32>
    %52 = vector.shape_cast %51 : vector<1x1x8x8xf32> to vector<8x8xf32>
    %c0_63 = arith.constant 0 : index
    %c126 = arith.constant 126 : index
    %53 = vector.load %arg14[%c0_63, %c126] : memref<8x256xf32, #tpu.memory_space<vmem>>, vector<8x128xf32>
    %cst_64 = arith.constant dense<0.000000e+00> : vector<8x128xf32>
    %54 = tpu.matmul %52, %53, %cst_64 {dimension_numbers = #tpu.dot_dimension_numbers<[1], [0], [0], [1], [0, 0, 1, 1], [], []>} : vector<8x8xf32>, vector<8x128xf32>, vector<8x128xf32> -> vector<8x128xf32>
    %55 = arith.addf %50, %54 : vector<8x128xf32>
    %c0_65 = arith.constant 0 : index
    %c5 = arith.constant 5 : index
    %c0_66 = arith.constant 0 : index
    %c0_67 = arith.constant 0 : index
    %56 = vector.load %arg6[%c0_65, %c5, %c0_66, %c0_67] : memref<3x7x8x8xf32, #tpu.memory_space<vmem>>, vector<1x1x8x8xf32>
    %57 = vector.shape_cast %56 : vector<1x1x8x8xf32> to vector<8x8xf32>
    %c0_68 = arith.constant 0 : index
    %c127 = arith.constant 127 : index
    %58 = vector.load %arg14[%c0_68, %c127] : memref<8x256xf32, #tpu.memory_space<vmem>>, vector<8x128xf32>
    %cst_69 = arith.constant dense<0.000000e+00> : vector<8x128xf32>
    %59 = tpu.matmul %57, %58, %cst_69 {dimension_numbers = #tpu.dot_dimension_numbers<[1], [0], [0], [1], [0, 0, 1, 1], [], []>} : vector<8x8xf32>, vector<8x128xf32>, vector<8x128xf32> -> vector<8x128xf32>
    %60 = arith.addf %55, %59 : vector<8x128xf32>
    %c0_70 = arith.constant 0 : index
    %c6 = arith.constant 6 : index
    %c0_71 = arith.constant 0 : index
    %c0_72 = arith.constant 0 : index
    %61 = vector.load %arg6[%c0_70, %c6, %c0_71, %c0_72] : memref<3x7x8x8xf32, #tpu.memory_space<vmem>>, vector<1x1x8x8xf32>
    %62 = vector.shape_cast %61 : vector<1x1x8x8xf32> to vector<8x8xf32>
    %c0_73 = arith.constant 0 : index
    %c128_74 = arith.constant 128 : index
    %63 = vector.load %arg14[%c0_73, %c128_74] : memref<8x256xf32, #tpu.memory_space<vmem>>, vector<8x128xf32>
    %cst_75 = arith.constant dense<0.000000e+00> : vector<8x128xf32>
    %64 = tpu.matmul %62, %63, %cst_75 {dimension_numbers = #tpu.dot_dimension_numbers<[1], [0], [0], [1], [0, 0, 1, 1], [], []>} : vector<8x8xf32>, vector<8x128xf32>, vector<8x128xf32> -> vector<8x128xf32>
    %65 = arith.addf %60, %64 : vector<8x128xf32>
    %c0_76 = arith.constant 0 : index
    %c0_77 = arith.constant 0 : index
    %c0_78 = arith.constant 0 : index
    %66 = vector.load %arg7[%c0_76, %c0_77, %c0_78] : memref<3x8x1xf32, #tpu.memory_space<vmem>>, vector<1x8x1xf32>
    %67 = vector.shape_cast %66 : vector<1x8x1xf32> to vector<8x1xf32>
    %68 = vector.broadcast %67 : vector<8x1xf32> to vector<8x128xf32>
    %69 = arith.addf %65, %68 : vector<8x128xf32>
    %cst_79 = arith.constant 0.000000e+00 : f32
    %70 = vector.broadcast %cst_79 : f32 to vector<8x128xf32>
    %71 = arith.cmpf ogt, %69, %70 : vector<8x128xf32>
    %cst_80 = arith.constant 1.000000e-01 : f32
    %72 = vector.broadcast %cst_80 : f32 to vector<8x128xf32>
    %73 = arith.mulf %72, %69 : vector<8x128xf32>
    %74 = arith.select %71, %69, %73 : vector<8x128xi1>, vector<8x128xf32>
    %c0_81 = arith.constant 0 : index
    %c0_82 = arith.constant 0 : index
    %c0_83 = arith.constant 0 : index
    %75 = vector.load %arg8[%c0_81, %c0_82, %c0_83] : memref<3x8x8xf32, #tpu.memory_space<vmem>>, vector<1x8x8xf32>
    %76 = vector.shape_cast %75 : vector<1x8x8xf32> to vector<8x8xf32>
    %cst_84 = arith.constant dense<0.000000e+00> : vector<8x128xf32>
    %77 = tpu.matmul %76, %74, %cst_84 {dimension_numbers = #tpu.dot_dimension_numbers<[1], [0], [0], [1], [0, 0, 1, 1], [], []>} : vector<8x8xf32>, vector<8x128xf32>, vector<8x128xf32> -> vector<8x128xf32>
    %c0_85 = arith.constant 0 : index
    %c0_86 = arith.constant 0 : index
    %c0_87 = arith.constant 0 : index
    %78 = vector.load %arg9[%c0_85, %c0_86, %c0_87] : memref<3x8x1xf32, #tpu.memory_space<vmem>>, vector<1x8x1xf32>
    %79 = vector.shape_cast %78 : vector<1x8x1xf32> to vector<8x1xf32>
    %80 = vector.broadcast %79 : vector<8x1xf32> to vector<8x128xf32>
    %81 = arith.addf %77, %80 : vector<8x128xf32>
    %c0_88 = arith.constant 0 : index
    %c0_89 = arith.constant 0 : index
    %82 = vector.load %arg13[%c0_88, %c0_89] : memref<8x128xf32, #tpu.memory_space<vmem>>, vector<8x128xf32>
    %83 = arith.addf %82, %81 : vector<8x128xf32>
    %cst_90 = arith.constant 0.000000e+00 : f32
    %84 = vector.broadcast %cst_90 : f32 to vector<8x128xf32>
    %85 = arith.cmpf ogt, %83, %84 : vector<8x128xf32>
    %cst_91 = arith.constant 1.000000e-01 : f32
    %86 = vector.broadcast %cst_91 : f32 to vector<8x128xf32>
    %87 = arith.mulf %86, %83 : vector<8x128xf32>
    %88 = arith.select %85, %83, %87 : vector<8x128xi1>, vector<8x128xf32>
    %c0_92 = arith.constant 0 : index
    %c0_93 = arith.constant 0 : index
    %89 = vector.load %arg13[%c0_92, %c0_93] : memref<8x128xf32, #tpu.memory_space<vmem>>, vector<8x128xf32>
    tpu.vector_store %arg13[%c0_92, %c0_93], %88 {strides = array<i32>} : memref<8x128xf32, #tpu.memory_space<vmem>>, vector<8x128xf32>,
    %c0_94 = arith.constant 0 : index
    %c128_95 = arith.constant 128 : index
    %90 = vector.load %arg14[%c0_94, %c128_95] : memref<8x256xf32, #tpu.memory_space<vmem>>, vector<8x128xf32>
    %c0_96 = arith.constant 0 : index
    %c0_97 = arith.constant 0 : index
    %91 = vector.load %arg14[%c0_96, %c0_97] : memref<8x256xf32, #tpu.memory_space<vmem>>, vector<8x128xf32>
    tpu.vector_store %arg14[%c0_96, %c0_97], %90 {strides = array<i32>} : memref<8x256xf32, #tpu.memory_space<vmem>>, vector<8x128xf32>,
    %c0_i32_98 = arith.constant 0 : i32
    %92 = arith.cmpi eq, %arg1, %c0_i32_98 : i32
    %93 = arith.extui %92 : i1 to i32
    %c0_i32_99 = arith.constant 0 : i32
    %94 = arith.cmpi ne, %93, %c0_i32_99 : i32
    scf.if %94 {
      %cst_249 = arith.constant 0.000000e+00 : f32
      %226 = vector.broadcast %cst_249 : f32 to vector<8x128xf32>
      %c0_250 = arith.constant 0 : index
      %c0_251 = arith.constant 0 : index
      %227 = vector.load %arg15[%c0_250, %c0_251] : memref<8x256xf32, #tpu.memory_space<vmem>>, vector<8x128xf32>
      tpu.vector_store %arg15[%c0_250, %c0_251], %226 {strides = array<i32>} : memref<8x256xf32, #tpu.memory_space<vmem>>, vector<8x128xf32>,
    } else {
    }
    %c0_100 = arith.constant 0 : index
    %c0_101 = arith.constant 0 : index
    %95 = vector.load %arg13[%c0_100, %c0_101] : memref<8x128xf32, #tpu.memory_space<vmem>>, vector<8x128xf32>
    %c0_102 = arith.constant 0 : index
    %c128_103 = arith.constant 128 : index
    %96 = vector.load %arg15[%c0_102, %c128_103] : memref<8x256xf32, #tpu.memory_space<vmem>>, vector<8x128xf32>
    tpu.vector_store %arg15[%c0_102, %c128_103], %95 {strides = array<i32>} : memref<8x256xf32, #tpu.memory_space<vmem>>, vector<8x128xf32>,
    %c1_104 = arith.constant 1 : index
    %c0_105 = arith.constant 0 : index
    %c0_106 = arith.constant 0 : index
    %c0_107 = arith.constant 0 : index
    %97 = vector.load %arg6[%c1_104, %c0_105, %c0_106, %c0_107] : memref<3x7x8x8xf32, #tpu.memory_space<vmem>>, vector<1x1x8x8xf32>
    %98 = vector.shape_cast %97 : vector<1x1x8x8xf32> to vector<8x8xf32>
    %c0_108 = arith.constant 0 : index
    %c110 = arith.constant 110 : index
    %99 = vector.load %arg15[%c0_108, %c110] : memref<8x256xf32, #tpu.memory_space<vmem>>, vector<8x128xf32>
    %cst_109 = arith.constant dense<0.000000e+00> : vector<8x128xf32>
    %100 = tpu.matmul %98, %99, %cst_109 {dimension_numbers = #tpu.dot_dimension_numbers<[1], [0], [0], [1], [0, 0, 1, 1], [], []>} : vector<8x8xf32>, vector<8x128xf32>, vector<8x128xf32> -> vector<8x128xf32>
    %c1_110 = arith.constant 1 : index
    %c1_111 = arith.constant 1 : index
    %c0_112 = arith.constant 0 : index
    %c0_113 = arith.constant 0 : index
    %101 = vector.load %arg6[%c1_110, %c1_111, %c0_112, %c0_113] : memref<3x7x8x8xf32, #tpu.memory_space<vmem>>, vector<1x1x8x8xf32>
    %102 = vector.shape_cast %101 : vector<1x1x8x8xf32> to vector<8x8xf32>
    %c0_114 = arith.constant 0 : index
    %c113 = arith.constant 113 : index
    %103 = vector.load %arg15[%c0_114, %c113] : memref<8x256xf32, #tpu.memory_space<vmem>>, vector<8x128xf32>
    %cst_115 = arith.constant dense<0.000000e+00> : vector<8x128xf32>
    %104 = tpu.matmul %102, %103, %cst_115 {dimension_numbers = #tpu.dot_dimension_numbers<[1], [0], [0], [1], [0, 0, 1, 1], [], []>} : vector<8x8xf32>, vector<8x128xf32>, vector<8x128xf32> -> vector<8x128xf32>
    %105 = arith.addf %100, %104 : vector<8x128xf32>
    %c1_116 = arith.constant 1 : index
    %c2_117 = arith.constant 2 : index
    %c0_118 = arith.constant 0 : index
    %c0_119 = arith.constant 0 : index
    %106 = vector.load %arg6[%c1_116, %c2_117, %c0_118, %c0_119] : memref<3x7x8x8xf32, #tpu.memory_space<vmem>>, vector<1x1x8x8xf32>
    %107 = vector.shape_cast %106 : vector<1x1x8x8xf32> to vector<8x8xf32>
    %c0_120 = arith.constant 0 : index
    %c116 = arith.constant 116 : index
    %108 = vector.load %arg15[%c0_120, %c116] : memref<8x256xf32, #tpu.memory_space<vmem>>, vector<8x128xf32>
    %cst_121 = arith.constant dense<0.000000e+00> : vector<8x128xf32>
    %109 = tpu.matmul %107, %108, %cst_121 {dimension_numbers = #tpu.dot_dimension_numbers<[1], [0], [0], [1], [0, 0, 1, 1], [], []>} : vector<8x8xf32>, vector<8x128xf32>, vector<8x128xf32> -> vector<8x128xf32>
    %110 = arith.addf %105, %109 : vector<8x128xf32>
    %c1_122 = arith.constant 1 : index
    %c3_123 = arith.constant 3 : index
    %c0_124 = arith.constant 0 : index
    %c0_125 = arith.constant 0 : index
    %111 = vector.load %arg6[%c1_122, %c3_123, %c0_124, %c0_125] : memref<3x7x8x8xf32, #tpu.memory_space<vmem>>, vector<1x1x8x8xf32>
    %112 = vector.shape_cast %111 : vector<1x1x8x8xf32> to vector<8x8xf32>
    %c0_126 = arith.constant 0 : index
    %c119 = arith.constant 119 : index
    %113 = vector.load %arg15[%c0_126, %c119] : memref<8x256xf32, #tpu.memory_space<vmem>>, vector<8x128xf32>
    %cst_127 = arith.constant dense<0.000000e+00> : vector<8x128xf32>
    %114 = tpu.matmul %112, %113, %cst_127 {dimension_numbers = #tpu.dot_dimension_numbers<[1], [0], [0], [1], [0, 0, 1, 1], [], []>} : vector<8x8xf32>, vector<8x128xf32>, vector<8x128xf32> -> vector<8x128xf32>
    %115 = arith.addf %110, %114 : vector<8x128xf32>
    %c1_128 = arith.constant 1 : index
    %c4_129 = arith.constant 4 : index
    %c0_130 = arith.constant 0 : index
    %c0_131 = arith.constant 0 : index
    %116 = vector.load %arg6[%c1_128, %c4_129, %c0_130, %c0_131] : memref<3x7x8x8xf32, #tpu.memory_space<vmem>>, vector<1x1x8x8xf32>
    %117 = vector.shape_cast %116 : vector<1x1x8x8xf32> to vector<8x8xf32>
    %c0_132 = arith.constant 0 : index
    %c122_133 = arith.constant 122 : index
    %118 = vector.load %arg15[%c0_132, %c122_133] : memref<8x256xf32, #tpu.memory_space<vmem>>, vector<8x128xf32>
    %cst_134 = arith.constant dense<0.000000e+00> : vector<8x128xf32>
    %119 = tpu.matmul %117, %118, %cst_134 {dimension_numbers = #tpu.dot_dimension_numbers<[1], [0], [0], [1], [0, 0, 1, 1], [], []>} : vector<8x8xf32>, vector<8x128xf32>, vector<8x128xf32> -> vector<8x128xf32>
    %120 = arith.addf %115, %119 : vector<8x128xf32>
    %c1_135 = arith.constant 1 : index
    %c5_136 = arith.constant 5 : index
    %c0_137 = arith.constant 0 : index
    %c0_138 = arith.constant 0 : index
    %121 = vector.load %arg6[%c1_135, %c5_136, %c0_137, %c0_138] : memref<3x7x8x8xf32, #tpu.memory_space<vmem>>, vector<1x1x8x8xf32>
    %122 = vector.shape_cast %121 : vector<1x1x8x8xf32> to vector<8x8xf32>
    %c0_139 = arith.constant 0 : index
    %c125_140 = arith.constant 125 : index
    %123 = vector.load %arg15[%c0_139, %c125_140] : memref<8x256xf32, #tpu.memory_space<vmem>>, vector<8x128xf32>
    %cst_141 = arith.constant dense<0.000000e+00> : vector<8x128xf32>
    %124 = tpu.matmul %122, %123, %cst_141 {dimension_numbers = #tpu.dot_dimension_numbers<[1], [0], [0], [1], [0, 0, 1, 1], [], []>} : vector<8x8xf32>, vector<8x128xf32>, vector<8x128xf32> -> vector<8x128xf32>
    %125 = arith.addf %120, %124 : vector<8x128xf32>
    %c1_142 = arith.constant 1 : index
    %c6_143 = arith.constant 6 : index
    %c0_144 = arith.constant 0 : index
    %c0_145 = arith.constant 0 : index
    %126 = vector.load %arg6[%c1_142, %c6_143, %c0_144, %c0_145] : memref<3x7x8x8xf32, #tpu.memory_space<vmem>>, vector<1x1x8x8xf32>
    %127 = vector.shape_cast %126 : vector<1x1x8x8xf32> to vector<8x8xf32>
    %c0_146 = arith.constant 0 : index
    %c128_147 = arith.constant 128 : index
    %128 = vector.load %arg15[%c0_146, %c128_147] : memref<8x256xf32, #tpu.memory_space<vmem>>, vector<8x128xf32>
    %cst_148 = arith.constant dense<0.000000e+00> : vector<8x128xf32>
    %129 = tpu.matmul %127, %128, %cst_148 {dimension_numbers = #tpu.dot_dimension_numbers<[1], [0], [0], [1], [0, 0, 1, 1], [], []>} : vector<8x8xf32>, vector<8x128xf32>, vector<8x128xf32> -> vector<8x128xf32>
    %130 = arith.addf %125, %129 : vector<8x128xf32>
    %c1_149 = arith.constant 1 : index
    %c0_150 = arith.constant 0 : index
    %c0_151 = arith.constant 0 : index
    %131 = vector.load %arg7[%c1_149, %c0_150, %c0_151] : memref<3x8x1xf32, #tpu.memory_space<vmem>>, vector<1x8x1xf32>
    %132 = vector.shape_cast %131 : vector<1x8x1xf32> to vector<8x1xf32>
    %133 = vector.broadcast %132 : vector<8x1xf32> to vector<8x128xf32>
    %134 = arith.addf %130, %133 : vector<8x128xf32>
    %cst_152 = arith.constant 0.000000e+00 : f32
    %135 = vector.broadcast %cst_152 : f32 to vector<8x128xf32>
    %136 = arith.cmpf ogt, %134, %135 : vector<8x128xf32>
    %cst_153 = arith.constant 1.000000e-01 : f32
    %137 = vector.broadcast %cst_153 : f32 to vector<8x128xf32>
    %138 = arith.mulf %137, %134 : vector<8x128xf32>
    %139 = arith.select %136, %134, %138 : vector<8x128xi1>, vector<8x128xf32>
    %c1_154 = arith.constant 1 : index
    %c0_155 = arith.constant 0 : index
    %c0_156 = arith.constant 0 : index
    %140 = vector.load %arg8[%c1_154, %c0_155, %c0_156] : memref<3x8x8xf32, #tpu.memory_space<vmem>>, vector<1x8x8xf32>
    %141 = vector.shape_cast %140 : vector<1x8x8xf32> to vector<8x8xf32>
    %cst_157 = arith.constant dense<0.000000e+00> : vector<8x128xf32>
    %142 = tpu.matmul %141, %139, %cst_157 {dimension_numbers = #tpu.dot_dimension_numbers<[1], [0], [0], [1], [0, 0, 1, 1], [], []>} : vector<8x8xf32>, vector<8x128xf32>, vector<8x128xf32> -> vector<8x128xf32>
    %c1_158 = arith.constant 1 : index
    %c0_159 = arith.constant 0 : index
    %c0_160 = arith.constant 0 : index
    %143 = vector.load %arg9[%c1_158, %c0_159, %c0_160] : memref<3x8x1xf32, #tpu.memory_space<vmem>>, vector<1x8x1xf32>
    %144 = vector.shape_cast %143 : vector<1x8x1xf32> to vector<8x1xf32>
    %145 = vector.broadcast %144 : vector<8x1xf32> to vector<8x128xf32>
    %146 = arith.addf %142, %145 : vector<8x128xf32>
    %c0_161 = arith.constant 0 : index
    %c0_162 = arith.constant 0 : index
    %147 = vector.load %arg13[%c0_161, %c0_162] : memref<8x128xf32, #tpu.memory_space<vmem>>, vector<8x128xf32>
    %148 = arith.addf %147, %146 : vector<8x128xf32>
    %cst_163 = arith.constant 0.000000e+00 : f32
    %149 = vector.broadcast %cst_163 : f32 to vector<8x128xf32>
    %150 = arith.cmpf ogt, %148, %149 : vector<8x128xf32>
    %cst_164 = arith.constant 1.000000e-01 : f32
    %151 = vector.broadcast %cst_164 : f32 to vector<8x128xf32>
    %152 = arith.mulf %151, %148 : vector<8x128xf32>
    %153 = arith.select %150, %148, %152 : vector<8x128xi1>, vector<8x128xf32>
    %c0_165 = arith.constant 0 : index
    %c0_166 = arith.constant 0 : index
    %154 = vector.load %arg13[%c0_165, %c0_166] : memref<8x128xf32, #tpu.memory_space<vmem>>, vector<8x128xf32>
    tpu.vector_store %arg13[%c0_165, %c0_166], %153 {strides = array<i32>} : memref<8x128xf32, #tpu.memory_space<vmem>>, vector<8x128xf32>,
    %c0_167 = arith.constant 0 : index
    %c128_168 = arith.constant 128 : index
    %155 = vector.load %arg15[%c0_167, %c128_168] : memref<8x256xf32, #tpu.memory_space<vmem>>, vector<8x128xf32>
    %c0_169 = arith.constant 0 : index
    %c0_170 = arith.constant 0 : index
    %156 = vector.load %arg15[%c0_169, %c0_170] : memref<8x256xf32, #tpu.memory_space<vmem>>, vector<8x128xf32>
    tpu.vector_store %arg15[%c0_169, %c0_170], %155 {strides = array<i32>} : memref<8x256xf32, #tpu.memory_space<vmem>>, vector<8x128xf32>,
    %c0_i32_171 = arith.constant 0 : i32
    %157 = arith.cmpi eq, %arg1, %c0_i32_171 : i32
    %158 = arith.extui %157 : i1 to i32
    %c0_i32_172 = arith.constant 0 : i32
    %159 = arith.cmpi ne, %158, %c0_i32_172 : i32
    scf.if %159 {
      %cst_249 = arith.constant 0.000000e+00 : f32
      %226 = vector.broadcast %cst_249 : f32 to vector<8x128xf32>
      %c0_250 = arith.constant 0 : index
      %c0_251 = arith.constant 0 : index
      %227 = vector.load %arg16[%c0_250, %c0_251] : memref<8x256xf32, #tpu.memory_space<vmem>>, vector<8x128xf32>
      tpu.vector_store %arg16[%c0_250, %c0_251], %226 {strides = array<i32>} : memref<8x256xf32, #tpu.memory_space<vmem>>, vector<8x128xf32>,
    } else {
    }
    %c0_173 = arith.constant 0 : index
    %c0_174 = arith.constant 0 : index
    %160 = vector.load %arg13[%c0_173, %c0_174] : memref<8x128xf32, #tpu.memory_space<vmem>>, vector<8x128xf32>
    %c0_175 = arith.constant 0 : index
    %c128_176 = arith.constant 128 : index
    %161 = vector.load %arg16[%c0_175, %c128_176] : memref<8x256xf32, #tpu.memory_space<vmem>>, vector<8x128xf32>
    tpu.vector_store %arg16[%c0_175, %c128_176], %160 {strides = array<i32>} : memref<8x256xf32, #tpu.memory_space<vmem>>, vector<8x128xf32>,
    %c2_177 = arith.constant 2 : index
    %c0_178 = arith.constant 0 : index
    %c0_179 = arith.constant 0 : index
    %c0_180 = arith.constant 0 : index
    %162 = vector.load %arg6[%c2_177, %c0_178, %c0_179, %c0_180] : memref<3x7x8x8xf32, #tpu.memory_space<vmem>>, vector<1x1x8x8xf32>
    %163 = vector.shape_cast %162 : vector<1x1x8x8xf32> to vector<8x8xf32>
    %c0_181 = arith.constant 0 : index
    %c74 = arith.constant 74 : index
    %164 = vector.load %arg16[%c0_181, %c74] : memref<8x256xf32, #tpu.memory_space<vmem>>, vector<8x128xf32>
    %cst_182 = arith.constant dense<0.000000e+00> : vector<8x128xf32>
    %165 = tpu.matmul %163, %164, %cst_182 {dimension_numbers = #tpu.dot_dimension_numbers<[1], [0], [0], [1], [0, 0, 1, 1], [], []>} : vector<8x8xf32>, vector<8x128xf32>, vector<8x128xf32> -> vector<8x128xf32>
    %c2_183 = arith.constant 2 : index
    %c1_184 = arith.constant 1 : index
    %c0_185 = arith.constant 0 : index
    %c0_186 = arith.constant 0 : index
    %166 = vector.load %arg6[%c2_183, %c1_184, %c0_185, %c0_186] : memref<3x7x8x8xf32, #tpu.memory_space<vmem>>, vector<1x1x8x8xf32>
    %167 = vector.shape_cast %166 : vector<1x1x8x8xf32> to vector<8x8xf32>
    %c0_187 = arith.constant 0 : index
    %c83 = arith.constant 83 : index
    %168 = vector.load %arg16[%c0_187, %c83] : memref<8x256xf32, #tpu.memory_space<vmem>>, vector<8x128xf32>
    %cst_188 = arith.constant dense<0.000000e+00> : vector<8x128xf32>
    %169 = tpu.matmul %167, %168, %cst_188 {dimension_numbers = #tpu.dot_dimension_numbers<[1], [0], [0], [1], [0, 0, 1, 1], [], []>} : vector<8x8xf32>, vector<8x128xf32>, vector<8x128xf32> -> vector<8x128xf32>
    %170 = arith.addf %165, %169 : vector<8x128xf32>
    %c2_189 = arith.constant 2 : index
    %c2_190 = arith.constant 2 : index
    %c0_191 = arith.constant 0 : index
    %c0_192 = arith.constant 0 : index
    %171 = vector.load %arg6[%c2_189, %c2_190, %c0_191, %c0_192] : memref<3x7x8x8xf32, #tpu.memory_space<vmem>>, vector<1x1x8x8xf32>
    %172 = vector.shape_cast %171 : vector<1x1x8x8xf32> to vector<8x8xf32>
    %c0_193 = arith.constant 0 : index
    %c92 = arith.constant 92 : index
    %173 = vector.load %arg16[%c0_193, %c92] : memref<8x256xf32, #tpu.memory_space<vmem>>, vector<8x128xf32>
    %cst_194 = arith.constant dense<0.000000e+00> : vector<8x128xf32>
    %174 = tpu.matmul %172, %173, %cst_194 {dimension_numbers = #tpu.dot_dimension_numbers<[1], [0], [0], [1], [0, 0, 1, 1], [], []>} : vector<8x8xf32>, vector<8x128xf32>, vector<8x128xf32> -> vector<8x128xf32>
    %175 = arith.addf %170, %174 : vector<8x128xf32>
    %c2_195 = arith.constant 2 : index
    %c3_196 = arith.constant 3 : index
    %c0_197 = arith.constant 0 : index
    %c0_198 = arith.constant 0 : index
    %176 = vector.load %arg6[%c2_195, %c3_196, %c0_197, %c0_198] : memref<3x7x8x8xf32, #tpu.memory_space<vmem>>, vector<1x1x8x8xf32>
    %177 = vector.shape_cast %176 : vector<1x1x8x8xf32> to vector<8x8xf32>
    %c0_199 = arith.constant 0 : index
    %c101 = arith.constant 101 : index
    %178 = vector.load %arg16[%c0_199, %c101] : memref<8x256xf32, #tpu.memory_space<vmem>>, vector<8x128xf32>
    %cst_200 = arith.constant dense<0.000000e+00> : vector<8x128xf32>
    %179 = tpu.matmul %177, %178, %cst_200 {dimension_numbers = #tpu.dot_dimension_numbers<[1], [0], [0], [1], [0, 0, 1, 1], [], []>} : vector<8x8xf32>, vector<8x128xf32>, vector<8x128xf32> -> vector<8x128xf32>
    %180 = arith.addf %175, %179 : vector<8x128xf32>
    %c2_201 = arith.constant 2 : index
    %c4_202 = arith.constant 4 : index
    %c0_203 = arith.constant 0 : index
    %c0_204 = arith.constant 0 : index
    %181 = vector.load %arg6[%c2_201, %c4_202, %c0_203, %c0_204] : memref<3x7x8x8xf32, #tpu.memory_space<vmem>>, vector<1x1x8x8xf32>
    %182 = vector.shape_cast %181 : vector<1x1x8x8xf32> to vector<8x8xf32>
    %c0_205 = arith.constant 0 : index
    %c110_206 = arith.constant 110 : index
    %183 = vector.load %arg16[%c0_205, %c110_206] : memref<8x256xf32, #tpu.memory_space<vmem>>, vector<8x128xf32>
    %cst_207 = arith.constant dense<0.000000e+00> : vector<8x128xf32>
    %184 = tpu.matmul %182, %183, %cst_207 {dimension_numbers = #tpu.dot_dimension_numbers<[1], [0], [0], [1], [0, 0, 1, 1], [], []>} : vector<8x8xf32>, vector<8x128xf32>, vector<8x128xf32> -> vector<8x128xf32>
    %185 = arith.addf %180, %184 : vector<8x128xf32>
    %c2_208 = arith.constant 2 : index
    %c5_209 = arith.constant 5 : index
    %c0_210 = arith.constant 0 : index
    %c0_211 = arith.constant 0 : index
    %186 = vector.load %arg6[%c2_208, %c5_209, %c0_210, %c0_211] : memref<3x7x8x8xf32, #tpu.memory_space<vmem>>, vector<1x1x8x8xf32>
    %187 = vector.shape_cast %186 : vector<1x1x8x8xf32> to vector<8x8xf32>
    %c0_212 = arith.constant 0 : index
    %c119_213 = arith.constant 119 : index
    %188 = vector.load %arg16[%c0_212, %c119_213] : memref<8x256xf32, #tpu.memory_space<vmem>>, vector<8x128xf32>
    %cst_214 = arith.constant dense<0.000000e+00> : vector<8x128xf32>
    %189 = tpu.matmul %187, %188, %cst_214 {dimension_numbers = #tpu.dot_dimension_numbers<[1], [0], [0], [1], [0, 0, 1, 1], [], []>} : vector<8x8xf32>, vector<8x128xf32>, vector<8x128xf32> -> vector<8x128xf32>
    %190 = arith.addf %185, %189 : vector<8x128xf32>
    %c2_215 = arith.constant 2 : index
    %c6_216 = arith.constant 6 : index
    %c0_217 = arith.constant 0 : index
    %c0_218 = arith.constant 0 : index
    %191 = vector.load %arg6[%c2_215, %c6_216, %c0_217, %c0_218] : memref<3x7x8x8xf32, #tpu.memory_space<vmem>>, vector<1x1x8x8xf32>
    %192 = vector.shape_cast %191 : vector<1x1x8x8xf32> to vector<8x8xf32>
    %c0_219 = arith.constant 0 : index
    %c128_220 = arith.constant 128 : index
    %193 = vector.load %arg16[%c0_219, %c128_220] : memref<8x256xf32, #tpu.memory_space<vmem>>, vector<8x128xf32>
    %cst_221 = arith.constant dense<0.000000e+00> : vector<8x128xf32>
    %194 = tpu.matmul %192, %193, %cst_221 {dimension_numbers = #tpu.dot_dimension_numbers<[1], [0], [0], [1], [0, 0, 1, 1], [], []>} : vector<8x8xf32>, vector<8x128xf32>, vector<8x128xf32> -> vector<8x128xf32>
    %195 = arith.addf %190, %194 : vector<8x128xf32>
    %c2_222 = arith.constant 2 : index
    %c0_223 = arith.constant 0 : index
    %c0_224 = arith.constant 0 : index
    %196 = vector.load %arg7[%c2_222, %c0_223, %c0_224] : memref<3x8x1xf32, #tpu.memory_space<vmem>>, vector<1x8x1xf32>
    %197 = vector.shape_cast %196 : vector<1x8x1xf32> to vector<8x1xf32>
    %198 = vector.broadcast %197 : vector<8x1xf32> to vector<8x128xf32>
    %199 = arith.addf %195, %198 : vector<8x128xf32>
    %cst_225 = arith.constant 0.000000e+00 : f32
    %200 = vector.broadcast %cst_225 : f32 to vector<8x128xf32>
    %201 = arith.cmpf ogt, %199, %200 : vector<8x128xf32>
    %cst_226 = arith.constant 1.000000e-01 : f32
    %202 = vector.broadcast %cst_226 : f32 to vector<8x128xf32>
    %203 = arith.mulf %202, %199 : vector<8x128xf32>
    %204 = arith.select %201, %199, %203 : vector<8x128xi1>, vector<8x128xf32>
    %c2_227 = arith.constant 2 : index
    %c0_228 = arith.constant 0 : index
    %c0_229 = arith.constant 0 : index
    %205 = vector.load %arg8[%c2_227, %c0_228, %c0_229] : memref<3x8x8xf32, #tpu.memory_space<vmem>>, vector<1x8x8xf32>
    %206 = vector.shape_cast %205 : vector<1x8x8xf32> to vector<8x8xf32>
    %cst_230 = arith.constant dense<0.000000e+00> : vector<8x128xf32>
    %207 = tpu.matmul %206, %204, %cst_230 {dimension_numbers = #tpu.dot_dimension_numbers<[1], [0], [0], [1], [0, 0, 1, 1], [], []>} : vector<8x8xf32>, vector<8x128xf32>, vector<8x128xf32> -> vector<8x128xf32>
    %c2_231 = arith.constant 2 : index
    %c0_232 = arith.constant 0 : index
    %c0_233 = arith.constant 0 : index
    %208 = vector.load %arg9[%c2_231, %c0_232, %c0_233] : memref<3x8x1xf32, #tpu.memory_space<vmem>>, vector<1x8x1xf32>
    %209 = vector.shape_cast %208 : vector<1x8x1xf32> to vector<8x1xf32>
    %210 = vector.broadcast %209 : vector<8x1xf32> to vector<8x128xf32>
    %211 = arith.addf %207, %210 : vector<8x128xf32>
    %c0_234 = arith.constant 0 : index
    %c0_235 = arith.constant 0 : index
    %212 = vector.load %arg13[%c0_234, %c0_235] : memref<8x128xf32, #tpu.memory_space<vmem>>, vector<8x128xf32>
    %213 = arith.addf %212, %211 : vector<8x128xf32>
    %cst_236 = arith.constant 0.000000e+00 : f32
    %214 = vector.broadcast %cst_236 : f32 to vector<8x128xf32>
    %215 = arith.cmpf ogt, %213, %214 : vector<8x128xf32>
    %cst_237 = arith.constant 1.000000e-01 : f32
    %216 = vector.broadcast %cst_237 : f32 to vector<8x128xf32>
    %217 = arith.mulf %216, %213 : vector<8x128xf32>
    %218 = arith.select %215, %213, %217 : vector<8x128xi1>, vector<8x128xf32>
    %c0_238 = arith.constant 0 : index
    %c0_239 = arith.constant 0 : index
    %219 = vector.load %arg13[%c0_238, %c0_239] : memref<8x128xf32, #tpu.memory_space<vmem>>, vector<8x128xf32>
    tpu.vector_store %arg13[%c0_238, %c0_239], %218 {strides = array<i32>} : memref<8x128xf32, #tpu.memory_space<vmem>>, vector<8x128xf32>,
    %c0_240 = arith.constant 0 : index
    %c128_241 = arith.constant 128 : index
    %220 = vector.load %arg16[%c0_240, %c128_241] : memref<8x256xf32, #tpu.memory_space<vmem>>, vector<8x128xf32>
    %c0_242 = arith.constant 0 : index
    %c0_243 = arith.constant 0 : index
    %221 = vector.load %arg16[%c0_242, %c0_243] : memref<8x256xf32, #tpu.memory_space<vmem>>, vector<8x128xf32>
    tpu.vector_store %arg16[%c0_242, %c0_243], %220 {strides = array<i32>} : memref<8x256xf32, #tpu.memory_space<vmem>>, vector<8x128xf32>,
    %c0_244 = arith.constant 0 : index
    %c0_245 = arith.constant 0 : index
    %222 = vector.load %arg13[%c0_244, %c0_245] : memref<8x128xf32, #tpu.memory_space<vmem>>, vector<8x128xf32>
    %c0_246 = arith.constant 0 : index
    %c0_247 = arith.constant 0 : index
    %c0_248 = arith.constant 0 : index
    %223 = vector.load %arg10[%c0_246, %c0_247, %c0_248] : memref<1x8x128xf32, #tpu.memory_space<vmem>>, vector<1x8x128xf32>
    %224 = vector.shape_cast %223 : vector<1x8x128xf32> to vector<8x128xf32>
    %225 = vector.shape_cast %222 : vector<8x128xf32> to vector<1x8x128xf32>
    tpu.vector_store %arg10[%c0_246, %c0_247, %c0_248], %225 {strides = array<i32>} : memref<1x8x128xf32, #tpu.memory_space<vmem>>, vector<1x8x128xf32>,
    return
  }
  func.func @transform_0(%arg0: i32, %arg1: i32) -> (i32, i32, i32, i32) {
    %c0_i32 = arith.constant 0 : i32
    %c0_i32_0 = arith.constant 0 : i32
    %c0_i32_1 = arith.constant 0 : i32
    return %arg0, %arg1, %c0_i32, %c0_i32_0 : i32, i32, i32, i32
  }
  func.func @transform_1(%arg0: i32, %arg1: i32) -> (i32, i32) {
    %c0_i32 = arith.constant 0 : i32
    %c0_i32_0 = arith.constant 0 : i32
    %c0_i32_1 = arith.constant 0 : i32
    return %c0_i32, %c0_i32_0 : i32, i32
  }
  func.func @transform_2(%arg0: i32, %arg1: i32) -> (i32, i32) {
    %c0_i32 = arith.constant 0 : i32
    %c0_i32_0 = arith.constant 0 : i32
    %c0_i32_1 = arith.constant 0 : i32
    return %c0_i32, %c0_i32_0 : i32, i32
  }
  func.func @transform_3(%arg0: i32, %arg1: i32) -> (i32, i32) {
    %c0_i32 = arith.constant 0 : i32
    %c0_i32_0 = arith.constant 0 : i32
    %c0_i32_1 = arith.constant 0 : i32
    return %c0_i32, %c0_i32_0 : i32, i32
  }
  func.func @transform_4(%arg0: i32, %arg1: i32) -> (i32, i32, i32, i32) {
    %c0_i32 = arith.constant 0 : i32
    %c0_i32_0 = arith.constant 0 : i32
    %c0_i32_1 = arith.constant 0 : i32
    %c0_i32_2 = arith.constant 0 : i32
    %c0_i32_3 = arith.constant 0 : i32
    return %c0_i32, %c0_i32_0, %c0_i32_1, %c0_i32_2 : i32, i32, i32, i32
  }
  func.func @transform_5(%arg0: i32, %arg1: i32) -> (i32, i32, i32) {
    %c0_i32 = arith.constant 0 : i32
    %c0_i32_0 = arith.constant 0 : i32
    %c0_i32_1 = arith.constant 0 : i32
    %c0_i32_2 = arith.constant 0 : i32
    return %c0_i32, %c0_i32_0, %c0_i32_1 : i32, i32, i32
  }
  func.func @transform_6(%arg0: i32, %arg1: i32) -> (i32, i32, i32) {
    %c0_i32 = arith.constant 0 : i32
    %c0_i32_0 = arith.constant 0 : i32
    %c0_i32_1 = arith.constant 0 : i32
    %c0_i32_2 = arith.constant 0 : i32
    return %c0_i32, %c0_i32_0, %c0_i32_1 : i32, i32, i32
  }
  func.func @transform_7(%arg0: i32, %arg1: i32) -> (i32, i32, i32) {
    %c0_i32 = arith.constant 0 : i32
    %c0_i32_0 = arith.constant 0 : i32
    %c0_i32_1 = arith.constant 0 : i32
    %c0_i32_2 = arith.constant 0 : i32
    return %c0_i32, %c0_i32_0, %c0_i32_1 : i32, i32, i32
  }
  func.func @transform_8(%arg0: i32, %arg1: i32) -> (i32, i32, i32) {
    %c0_i32 = arith.constant 0 : i32
    %c0_i32_0 = arith.constant 0 : i32
    return %arg0, %c0_i32, %arg1 : i32, i32, i32
  }
}

</mosaic_0001>

<bundles_post_ra>
// kernel: tpu_custom_call.1
= control target key start
LH: loop header
LB: loop body
LE: loop exit
PB: predicated region body
PF: predicated region fallthrough
CT: control target
= control target key end

     0   :  { %s4346_s0 = inlined_call_operand.hbm [shape: f32[2,4,4,66], index: 0, kind: input, shape index: {}]   ;;  %s4347_s1 = inlined_call_operand.hbm [shape: f32[66,132], index: 1, kind: input, shape index: {}]   ;;  %s4348_s2 = inlined_call_operand.hbm [shape: f32[8,20], index: 2, kind: input, shape index: {}]   ;;  %s4349_s3 = inlined_call_operand.hbm [shape: f32[8,1], index: 3, kind: input, shape index: {}]   ;;  %s4350_s4 = inlined_call_operand.hbm [shape: f32[3,7,8,8], index: 4, kind: input, shape index: {}]   ;;  %s4351_s5 = inlined_call_operand.hbm [shape: f32[3,8,1], index: 5, kind: input, shape index: {}]   ;;  %s4352_s6 = inlined_call_operand.hbm [shape: f32[3,8,8], index: 6, kind: input, shape index: {}]   ;;  %s4353_s7 = inlined_call_operand.hbm [shape: f32[3,8,1], index: 7, kind: input, shape index: {}]   ;;  %s4354_s8 = inlined_call_operand.hbm [shape: f32[2,8,512], index: 8, kind: output, shape index: {}]  }
   0x1   :  { %4364 = sst [smem:[#allocation31_spill]] %s4347_s1 }
   0x2   :  { %4365 = sst [smem:[#allocation32_spill]] %s4348_s2 }
   0x3   :  { %4366 = sst [smem:[#allocation33_spill]] %s4349_s3 }
   0x4   :  { %4367 = sst [smem:[#allocation34_spill]] %s4350_s4 }
   0x5   :  { %4368 = sst [smem:[#allocation35_spill]] %s4351_s5 }
   0x6   :  { %4369 = sst [smem:[#allocation36_spill]] %s4352_s6 }
   0x7   :  { %4370 = sst [smem:[#allocation37_spill]] %s4354_s8 }
   0x8   :  { %13 = vsyncpa [#allocation9], 0 }
   0x9   :  { %15 = vsyncpa [#allocation9 + $0x1], 0 }
   0xa   :  { %16 = vsyncpa [#allocation12], 0 }
   0xb   :  { %17 = vsyncpa [#allocation15], 0 }
   0xc   :  { %18 = vsyncpa [#allocation18], 0 }
   0xd   :  { %19 = vsyncpa [#allocation21], 0 }
   0xe   :  { %20 = vsyncpa [#allocation10], 0 }
   0xf   :  { %22 = vsyncpa [#allocation10 + $0x1], 0  ;;  %s3768_s27 = smov 0   ;;  %s3770_s28 = smov 0  }
  0x10   :  { %s3772_s29 = smov 0   ;;  %s3774_s30 = smov 0  }
  0x11   :  { %s3776_s9 = smov 0   ;;  %s3778_s10 = smov 0  }
  0x12   :  { %s3780_s11 = smov 0   ;;  %s3782_s12 = smov 0  }
  0x13 LB: > { %4371 = sst [smem:[#allocation29_spill]] %s3667_s30  ;;  %s4358_s13 = sadd.s32 4294967295, %s3683_s12   ;;  %s3683_s12 = sphi %s3782_s12, %s28_s12   ;;  %s3679_s11 = sphi %s3780_s11, %s4407_s11   ;;  %s3675_s10 = sphi %s3778_s10, %s4406_s10   ;;  %s3671_s9 = sphi %s3776_s9, %s4405_s9   ;;  %s3667_s30 = sphi %s3774_s30, %s4404_s30   ;;  %s3663_s29 = sphi %s3772_s29, %s4403_s29   ;;  %s3659_s28 = sphi %s3770_s28, %s4402_s28   ;;  %s3655_s27 = sphi %s3768_s27, %s4401_s27  }
  0x14   : > { %4372 = sst [smem:[#allocation30_spill]] %s3671_s9  ;;  %p2898_p0 = scmp.ge.s32.totalorder %s3683_s12, 1 }
  0x15   : > { %p3812_p1 = scmp.eq.s32.totalorder %s4358_s13, 0  ;;  %p248_p2 = scmp.lt.s32.totalorder %s3683_s12, 9 }
  0x16   : > { %s3685_s16 = smov [#allocation11]   ;;  %s3686_s19 = smov [#allocation14]  }
  0x17   : > { %s4373_s14 = scalar_select %p3812_p1, 1, 0 }
  0x18   : > { %p3817_p3 = pnand %p2898_p0, %p248_p2  ;;  %s260_s17 = sshll.u32 %s3685_s16, 4  ;;  %s261_s17 = int_to_ptr.vmem [resolvable:$true] %s260_s17 }
  0x19   : > { %s285_s20 = sshll.u32 %s3686_s19, 4  ;;  %s4376_s1 = sld [smem:[#allocation31_spill]]  ;;  %s3829_s20 = int_to_ptr.vmem [resolvable:$true] %s285_s20 }
  0x1a   : > { %s4374_s15 = scalar_select %p3817_p3, 1, 0 }
  0x1b   : > { %p3189_p4 = pneg %p3817_p3 }
  0x1d   : > { %p3825_p5 = pnand %p3189_p4, %p3812_p1 }
  0x1f   : > { %s3343_s23 = scalar_lea.hbm %s4376_s1, 2304  ;;  %p3839_p7 = pneg %p3825_p5 }
  0x20   : > { %p3344_p6 = scmp.ne.s32.totalorder %s4376_s1, %s3343_s23  ;;  %p3350_p10 = scmp.lt.u32.totalorder %s3343_s23, %s4376_s1 }
  0x22   : > { %p3346_p8 = pnand %p3839_p7, %p3344_p6 }
  0x24   : > { %p3347_p9 = pneg %p3346_p8 }
  0x26   : > { %p3352_p11 = pnand %p3350_p10, %p3347_p9 }
  0x28   : > { %3355 = shalt.err (!%p3352_p11)
}
  0x29   : > { %s3356_s21 = scalar_lea.vmem %s261_s17, 2304  ;;  %p3364_p2 = scmp.lt.s32.totalorder %s261_s17, %s261_s17 }
  0x2a   : > { %p3357_p12 = scmp.ne.s32.totalorder %s261_s17, %s3356_s21  ;;  %p3365_p4 = scmp.lt.s32.totalorder %s3356_s21, %s3356_s21 }
  0x2c   : > { %p3359_p13 = pnand %p3357_p12, %p3839_p7  ;;  %p3366_p3 = por %p3365_p4, %p3364_p2 }
  0x2e   : > { %p3360_p0 = pneg %p3359_p13 }
  0x30   : > { %p3367_p1 = pnand %p3366_p3, %p3360_p0 }
  0x32   : > { %3370 = shalt.err (!%p3367_p1)
}
  0x33   : > { %s3687_s22 = smov 256   ;;  %s3688_s24 = smov 16  }
  0x34   : > { %3192 = dma.hbm_to_vmem [thread:$0]  (!%p3825_p5), %s4376_s1, 2304, %s261_s17, [#allocation12], %s3687_s22, %s3687_s22, %s3688_s24  }
  0x35   : > { %s4378_s3 = sld [smem:[#allocation33_spill]] }
  0x3b   : > { %s3371_s13 = scalar_lea.hbm %s4378_s3, 128 }
  0x3c   : > { %p3372_p6 = scmp.ne.s32.totalorder %s4378_s3, %s3371_s13  ;;  %p3378_p8 = scmp.lt.u32.totalorder %s3371_s13, %s4378_s3 }
  0x3e   : > { %p3374_p3 = pnand %p3372_p6, %p3839_p7 }
  0x40   : > { %p3375_p1 = pneg %p3374_p3 }
  0x42   : > { %p3380_p9 = pnand %p3378_p8, %p3375_p1 }
  0x44   : > { %3383 = shalt.err (!%p3380_p9)
}
  0x45   : > { %s3384_s17 = scalar_lea.vmem %s3829_s20, 128  ;;  %p3392_p13 = scmp.lt.s32.totalorder %s3829_s20, %s3829_s20 }
  0x46   : > { %p3385_p10 = scmp.ne.s32.totalorder %s3829_s20, %s3384_s17  ;;  %p3393_p0 = scmp.lt.s32.totalorder %s3384_s17, %s3384_s17 }
  0x48   : > { %p3387_p11 = pnand %p3385_p10, %p3839_p7  ;;  %p3394_p2 = por %p3393_p0, %p3392_p13 }
  0x4a   : > { %p3388_p12 = pneg %p3387_p11 }
  0x4c   : > { %p3395_p4 = pnand %p3394_p2, %p3388_p12 }
  0x4e   : > { %3398 = shalt.err (!%p3395_p4)
}
  0x4f   : > { %3198 = dma.hbm_to_vmem [thread:$0]  (!%p3825_p5), %s4378_s3, 128, %s3829_s20, [#allocation15]  }
  0x50   : > { %s3689_s9 = smov [#allocation17]   ;;  %s3690_s22 = smov [#allocation13]  }
  0x51   : > { %s308_s13 = sshll.u32 %s3689_s9, 4  ;;  %s274_s24 = sshll.u32 %s3690_s22, 4  ;;  %s309_s13 = int_to_ptr.vmem [resolvable:$true] %s308_s13  ;;  %s3878_s24 = int_to_ptr.vmem [resolvable:$true] %s274_s24 }
  0x52   : > { %s4379_s5 = sld [smem:[#allocation35_spill]] }
  0x58   : > { %s3399_s16 = scalar_lea.hbm %s4379_s5, 384 }
  0x59   : > { %p3400_p6 = scmp.ne.s32.totalorder %s4379_s5, %s3399_s16  ;;  %p3406_p8 = scmp.lt.u32.totalorder %s3399_s16, %s4379_s5 }
  0x5b   : > { %p3402_p3 = pnand %p3400_p6, %p3839_p7 }
  0x5d   : > { %p3403_p1 = pneg %p3402_p3 }
  0x5f   : > { %p3408_p9 = pnand %p3406_p8, %p3403_p1 }
  0x61   : > { %3411 = shalt.err (!%p3408_p9)
}
  0x62   : > { %s3412_s8 = scalar_lea.vmem %s309_s13, 384  ;;  %p3420_p13 = scmp.lt.s32.totalorder %s309_s13, %s309_s13 }
  0x63   : > { %p3413_p10 = scmp.ne.s32.totalorder %s309_s13, %s3412_s8  ;;  %p3421_p0 = scmp.lt.s32.totalorder %s3412_s8, %s3412_s8 }
  0x65   : > { %p3415_p11 = pnand %p3413_p10, %p3839_p7  ;;  %p3422_p2 = por %p3421_p0, %p3420_p13 }
  0x67   : > { %p3416_p12 = pneg %p3415_p11 }
  0x69   : > { %p3423_p4 = pnand %p3422_p2, %p3416_p12 }
  0x6b   : > { %3426 = shalt.err (!%p3423_p4)
}
  0x6c   : > { %s4361_s30 = smov 128   ;;  %s3692_s9 = smov 8  }
  0x6d   : > { %3204 = dma.hbm_to_vmem [thread:$0]  (!%p3825_p5), %s4379_s5, 384, %s309_s13, [#allocation18], %s4361_s30, %s4361_s30, %s3692_s9  }
  0x6e   : > { %s4380_s2 = sld [smem:[#allocation32_spill]] }
  0x74   : > { %s3427_s19 = scalar_lea.hbm %s4380_s2, 128 }
  0x75   : > { %p3428_p6 = scmp.ne.s32.totalorder %s4380_s2, %s3427_s19  ;;  %p3434_p8 = scmp.lt.u32.totalorder %s3427_s19, %s4380_s2 }
  0x77   : > { %p3430_p3 = pnand %p3428_p6, %p3839_p7 }
  0x79   : > { %p3431_p1 = pneg %p3430_p3 }
  0x7b   : > { %p3436_p9 = pnand %p3434_p8, %p3431_p1 }
  0x7d   : > { %3439 = shalt.err (!%p3436_p9)
}
  0x7e   : > { %s3440_s13 = scalar_lea.vmem %s3878_s24, 128  ;;  %p3448_p13 = scmp.lt.s32.totalorder %s3878_s24, %s3878_s24 }
  0x7f   : > { %p3441_p10 = scmp.ne.s32.totalorder %s3878_s24, %s3440_s13  ;;  %p3449_p0 = scmp.lt.s32.totalorder %s3440_s13, %s3440_s13 }
  0x81   : > { %p3443_p11 = pnand %p3441_p10, %p3839_p7  ;;  %p3450_p2 = por %p3449_p0, %p3448_p13 }
  0x83   : > { %p3444_p12 = pneg %p3443_p11 }
  0x85   : > { %p3451_p4 = pnand %p3450_p2, %p3444_p12 }
  0x87   : > { %3454 = shalt.err (!%p3451_p4)
}
  0x88   : > { %3195 = dma.hbm_to_vmem [thread:$0]  (!%p3825_p5), %s4380_s2, 128, %s3878_s24, [#allocation12]  }
  0x89   : > { %s3693_s23 = smov [#allocation16]   ;;  %s3694_s19 = smov [#allocation19]  }
  0x8a   : > { %s295_s16 = sshll.u32 %s3693_s23, 4  ;;  %s321_s21 = sshll.u32 %s3694_s19, 4  ;;  %s296_s16 = int_to_ptr.vmem [resolvable:$true] %s295_s16  ;;  %s3924_s21 = int_to_ptr.vmem [resolvable:$true] %s321_s21 }
  0x8b   : > { %s4381_s4 = sld [smem:[#allocation34_spill]] }
  0x91   : > { %s3455_s8 = scalar_lea.hbm %s4381_s4, 2688 }
  0x92   : > { %p3456_p6 = scmp.ne.s32.totalorder %s4381_s4, %s3455_s8  ;;  %p3462_p8 = scmp.lt.u32.totalorder %s3455_s8, %s4381_s4 }
  0x94   : > { %p3458_p3 = pnand %p3456_p6, %p3839_p7 }
  0x96   : > { %p3459_p1 = pneg %p3458_p3 }
  0x98   : > { %p3464_p9 = pnand %p3462_p8, %p3459_p1 }
  0x9a   : > { %3467 = shalt.err (!%p3464_p9)
}
  0x9b   : > { %s3468_s25 = scalar_lea.vmem %s296_s16, 2688  ;;  %p3476_p13 = scmp.lt.s32.totalorder %s296_s16, %s296_s16 }
  0x9c   : > { %p3469_p10 = scmp.ne.s32.totalorder %s296_s16, %s3468_s25  ;;  %p3477_p0 = scmp.lt.s32.totalorder %s3468_s25, %s3468_s25 }
  0x9e   : > { %p3471_p11 = pnand %p3469_p10, %p3839_p7  ;;  %p3478_p2 = por %p3477_p0, %p3476_p13 }
  0xa0   : > { %p3472_p12 = pneg %p3471_p11 }
  0xa2   : > { %p3479_p4 = pnand %p3478_p2, %p3472_p12 }
  0xa4   : > { %3482 = shalt.err (!%p3479_p4)
}
  0xa5   : > { %s4382_s30 = smov 128   ;;  %s4383_s6 = sld [smem:[#allocation36_spill]] }
  0xa6   : > { %3201 = dma.hbm_to_vmem [thread:$0]  (!%p3825_p5), %s4381_s4, 2688, %s296_s16, [#allocation15], %s4382_s30, %s4382_s30, %s3692_s9  }
  0xab   : > { %s3483_s8 = scalar_lea.hbm %s4383_s6, 384 }
  0xac   : > { %p3484_p6 = scmp.ne.s32.totalorder %s4383_s6, %s3483_s8  ;;  %p3490_p8 = scmp.lt.u32.totalorder %s3483_s8, %s4383_s6 }
  0xae   : > { %p3486_p3 = pnand %p3484_p6, %p3839_p7 }
  0xb0   : > { %p3487_p1 = pneg %p3486_p3 }
  0xb2   : > { %p3492_p9 = pnand %p3490_p8, %p3487_p1 }
  0xb4   : > { %3495 = shalt.err (!%p3492_p9)
}
  0xb5   : > { %s3496_s16 = scalar_lea.vmem %s3924_s21, 384  ;;  %p3504_p13 = scmp.lt.s32.totalorder %s3924_s21, %s3924_s21 }
  0xb6   : > { %p3497_p10 = scmp.ne.s32.totalorder %s3924_s21, %s3496_s16  ;;  %p3505_p0 = scmp.lt.s32.totalorder %s3496_s16, %s3496_s16 }
  0xb8   : > { %p3499_p11 = pnand %p3497_p10, %p3839_p7  ;;  %p3506_p2 = por %p3505_p0, %p3504_p13 }
  0xba   : > { %p3500_p12 = pneg %p3499_p11 }
  0xbc   : > { %p3507_p4 = pnand %p3506_p2, %p3500_p12 }
  0xbe   : > { %3510 = shalt.err (!%p3507_p4)
}
  0xbf   : > { %3207 = dma.hbm_to_vmem [thread:$0]  (!%p3825_p5), %s4383_s6, 384, %s3924_s21, [#allocation18], %s4382_s30, %s4382_s30, %s3692_s9  }
  0xc0   : > { %s3695_s17 = smov [#allocation20]   ;;  %s3511_s22 = scalar_lea.hbm %s4353_s7, 384 }
  0xc1   : > { %s334_s20 = sshll.u32 %s3695_s17, 4  ;;  %p3512_p6 = scmp.ne.s32.totalorder %s4353_s7, %s3511_s22  ;;  %s335_s20 = int_to_ptr.vmem [resolvable:$true] %s334_s20 }
  0xc2   : > { %p3518_p8 = scmp.lt.u32.totalorder %s3511_s22, %s4353_s7 }
  0xc3   : > { %p3514_p3 = pnand %p3512_p6, %p3839_p7 }
  0xc5   : > { %p3515_p1 = pneg %p3514_p3 }
  0xc7   : > { %p3520_p9 = pnand %p3518_p8, %p3515_p1 }
  0xc9   : > { %3523 = shalt.err (!%p3520_p9)
}
  0xca   : > { %s3524_s21 = scalar_lea.vmem %s335_s20, 384  ;;  %p3532_p13 = scmp.lt.s32.totalorder %s335_s20, %s335_s20 }
  0xcb   : > { %p3525_p10 = scmp.ne.s32.totalorder %s335_s20, %s3524_s21  ;;  %p3533_p0 = scmp.lt.s32.totalorder %s3524_s21, %s3524_s21 }
  0xcd   : > { %p3527_p11 = pnand %p3525_p10, %p3839_p7  ;;  %p3534_p2 = por %p3533_p0, %p3532_p13 }
  0xcf   : > { %p3528_p12 = pneg %p3527_p11 }
  0xd1   : > { %p3535_p4 = pnand %p3534_p2, %p3528_p12 }
  0xd3   : > { %3538 = shalt.err (!%p3535_p4)
}
  0xd4   : > { %3210 = dma.hbm_to_vmem [thread:$0]  (!%p3825_p5), %s4353_s7, 384, %s335_s20, [#allocation21], %s4382_s30, %s4382_s30, %s3692_s9  }
  0xd5   : > { %s2897_s18 = sadd.s32 4294967294, %s3683_s12   ;;  %s37_s26 = sadd.s32 1, %s3675_s10 }
  0xd6   : > { %s40_s19 = sadd.s32 1, %s3679_s11  ;;  %p38_p7 = scmp.ge.s32.totalorder %s37_s26, 4 }
  0xd7   : > { %s49_s17 = sadd.s32 1, %s3663_s29  ;;  %p56_p6 = scmp.ne.s32.totalorder %s3663_s29, %s3659_s28 }
  0xd8   : > { %p57_p3 = scmp.eq.s32.totalorder %s3683_s12, 0  ;;  %s4409_s26 = smov (%p38_p7, %s37_s26), 0 }
  0xd9   : > { %s4411_s19 = smov (!%p38_p7, %s40_s19), %s3679_s11  ;;  %s45_s8 = ssub.s32 %s3675_s10, %s4409_s26 }
  0xda   : > { %p4006_p1 = por %p57_p3, %p56_p6  ;;  %p42_p5 = scmp.ge.s32.totalorder %s4411_s19, 2 }
  0xdb   : > { %p62_p8 = scmp.ne.s32.totalorder %s3659_s28, %s3655_s27  ;;  %s4385_s9 = sadd.s32 4294967295, %s3683_s12  }
  0xdc   : > { %p235_p9 = scmp.eq.s32.totalorder %s4385_s9, 7  ;;  %p241_p10 = scmp.eq.s32.totalorder %s2897_s18, 7 }
  0xdd   : > { %s4413_s19 = smov (%p42_p5, %s4411_s19), 0  ;;  %p4386_p11 = scmp.ne.s32.totalorder %s4373_s14, 0 }
  0xde   : > { %p4022_p13 = por %p235_p9, %p56_p6  ;;  %s44_s22 = ssub.s32 %s3679_s11, %s4413_s19 }
  0xdf   : > { %p4018_p12 = por %p4386_p11, %p62_p8  ;;  %p4028_p0 = por %p241_p10, %p62_p8 }
  0xe0   : > { %s4388_s20 = scalar_select %p4022_p13, 1, 0 }
  0xe1   : > { %s4389_s24 = scalar_select %p4028_p0, 1, 0 }
  0xe2   : > { %s46_s25 = sor.u32 %s45_s8, %s44_s22  ;;  %p3226_p2 = scmp.lt.s32.totalorder %s3683_s12, 8 }
  0xe3   : > { %p47_p4 = scmp.eq.s32.totalorder %s46_s25, 0  ;;  %s348_s16 = sand.u32 1, %s3663_s29  }
  0xe4   : > { %s2907_s21 = sshll.u32 %s348_s16, 2  ;;  %s2908_s23 = sshll.u32 %s3679_s11, 2 }
  0xe5   : > { %s4035_s1 = scalar_select %p47_p4, %s3663_s29, %s49_s17  }
  0xe6   : > { %s357_s18 = sadd.s32 %s3675_s10, %s2908_s23  ;;  %s352_s9 = scalar_lea.vmem [#allocation8], %s2907_s21 }
  0xe7   : > { %s361_s2 = sshll.u32 %s352_s9, 4  ;;  %s2909_s3 = sshll.u32 %s357_s18, 6  ;;  %s4039_s2 = int_to_ptr.vmem [resolvable:$true] %s361_s2 }
  0xe8   : > { %s4044_s6 = scalar_lea.hbm %s4346_s0, %s2909_s3  ;;  %p4048_p7 = pnand %p3226_p2, %p4006_p1 }
  0xe9   : > { %s349_s8 = scalar_lea.sflag [#allocation9], %s348_s16  ;;  %s3539_s22 = scalar_lea.hbm %s4044_s6, 64 }
  0xea   : > { %p3540_p6 = scmp.ne.s32.totalorder %s4044_s6, %s3539_s22  ;;  %p3541_p3 = pneg %p4048_p7 }
  0xeb   : > { %s3544_s5 = scalar_lea.hbm %s4346_s0, 512  ;;  %p3545_p1 = scmp.lt.u32.totalorder %s4044_s6, %s4346_s0 }
  0xec   : > { %p3542_p5 = pnand %p3541_p3, %p3540_p6  ;;  %p3546_p9 = scmp.lt.u32.totalorder %s3544_s5, %s3539_s22 }
  0xed   : > { %p3548_p11 = scmp.lt.u32.totalorder %s3539_s22, %s4044_s6 }
  0xee   : > { %p3543_p8 = pneg %p3542_p5  ;;  %p3547_p10 = por %p3546_p9, %p3545_p1 }
  0xf0   : > { %p3549_p2 = por %p3548_p11, %p3547_p10 }
  0xf2   : > { %p3550_p4 = pnand %p3549_p2, %p3543_p8 }
  0xf4   : > { %3553 = shalt.err (!%p3550_p4)
}
  0xf5   : > { %s3554_s16 = scalar_lea.vmem %s4039_s2, 64  ;;  %s3696_s21 = smov [#allocation8]  }
  0xf6   : > { %p3555_p6 = scmp.ne.s32.totalorder %s4039_s2, %s3554_s16  ;;  %s3559_s23 = sshll.u32 %s3696_s21, 4  ;;  %s3560_s23 = int_to_ptr.vmem [resolvable:$false] %s3559_s23 }
  0xf7   : > { %s3561_s18 = scalar_lea.vmem %s3560_s23, 128  ;;  %p3562_p13 = scmp.lt.s32.totalorder %s4039_s2, %s3560_s23 }
  0xf8   : > { %p3557_p5 = pnand %p3555_p6, %p3541_p3  ;;  %p3563_p1 = scmp.lt.s32.totalorder %s3561_s18, %s3554_s16 }
  0xfa   : > { %p3558_p0 = pneg %p3557_p5  ;;  %p3564_p9 = por %p3563_p1, %p3562_p13 }
  0xfc   : > { %p3565_p10 = pnand %p3564_p9, %p3558_p0 }
  0xfe   : > { %3568 = shalt.err (!%p3565_p10)
}
  0xff   : > { %3214 = dma.hbm_to_vmem [thread:$0]  (!%p4048_p7), %s4044_s6, 64, %s4039_s2, %s349_s8  }
 0x100   : > { %p4391_p8 = scmp.ne.s32.totalorder %s4374_s15, 0 }
 0x101   : > { %s4080_s9 = sand.u32 (!%p4391_p8), 1, %s3659_s28  }
 0x102   : > { %370 = sbr.rel (%p4391_p8) target bundleno = 2635 (0xa4b), region = 52  ;;  %s2911_s22 = sshll.u32 (!%p4391_p8), %s4080_s9, 2 }
 0x103   : > { %s373_s3 = scalar_lea.sflag (!%p4391_p8), [#allocation9], %s4080_s9  ;;  %s4084_s4 = scalar_lea.vmem (!%p4391_p8), [#allocation8], %s2911_s22 }
 0x109   : > { %3630 = dma.done.wait (%p4018_p12), %s373_s3, 64  }
 0x10a   : > { %3632 = vsyncadd (%p4018_p12), %s373_s3, 4294967232  ;;  %p4392_p13 = scmp.ne.s32.totalorder %s4373_s14, 0 }
 0x10c   : > { %3634 = dma.done.wait (%p4392_p13), [#allocation12], 2432  }
 0x10d   : > { %3636 = vsyncadd (%p4392_p13), [#allocation12], 4294964864 }
 0x10e   : > { %3638 = dma.done.wait (%p4392_p13), [#allocation15], 2816  }
 0x10f   : > { %3640 = vsyncadd (%p4392_p13), [#allocation15], 4294964480 }
 0x110   : > { %3642 = dma.done.wait (%p4392_p13), [#allocation18], 768  }
 0x111   : > { %3644 = vsyncadd (%p4392_p13), [#allocation18], 4294966528 }
 0x112   : > { %3646 = dma.done.wait (%p4392_p13), [#allocation21], 384  }
 0x113   : > { %3648 = vsyncadd (%p4392_p13), [#allocation21], 4294966912  ;;  %s2919_s2 = sshll.u32 %s4080_s9, 3  ;;  %v3697_v0 = vmov 0.0   ;;  %v439_v1 = vld [vmem:[#allocation11 + $0x8] sm:$0xff]  ;;  %v441_v2 = vld [vmem:[#allocation11 + $0x18] sm:$0xff] }
 0x114   : > { %531 = vmatprep.mubr.f32.mxu0 %v3697_v0  ;;  %v438_v3 = vld [vmem:[#allocation11] sm:$0xff]  ;;  %v3138_v4 = vpack.c.bf16 %v441_v2, %v439_v1  ;;  %v440_v5 = vld [vmem:[#allocation11 + $0x10] sm:$0xff]  ;;  %v443_v6 = vld [vmem:[#allocation11 + $0x28] sm:$0xff]  ;;  %vm460_vm0 = vcmask 1041408   ;;  %vm456_vm1 = vcmask 539648   ;;  %vm542_vm2 = vcmask 1043456  }
 0x115   : > { %v445_v7 = vld [vmem:[#allocation11 + $0x38] sm:$0xff]  ;;  %v3140_v8 = vpack.c.bf16 %v440_v5, %v438_v3  ;;  %v442_v10 = vld [vmem:[#allocation11 + $0x20] sm:$0xff]  ;;  %v444_v11 = vld [vmem:[#allocation11 + $0x30] sm:$0xff]  ;;  %vm543_vm3 = vcmask 31748   ;;  %s3698_s6 = smov 126   ;;  %s3699_s14 = smov 127  }
 0x116   : > { %v3142_v9 = vpack.c.bf16 %v445_v7, %v443_v6  ;;  %v447_v12 = vld [vmem:[#allocation11 + $0x48] sm:$0xff]  ;;  %3139 = vmatprep.subr.bf16.mxu0 %v3138_v4  ;;  %v449_v13 = vld [vmem:[#allocation11 + $0x58] sm:$0xff]  ;;  %v3144_v14 = vpack.c.bf16 %v444_v11, %v442_v10  ;;  %v446_v16 = vld [vmem:[#allocation11 + $0x40] sm:$0xff]  ;;  %v3700_v33 = vmov 0.0|0.0   ;;  %s3701_s15 = smov 125   ;;  %vm3702_vm5 = vmmov 0  }
 0x117   : > { %3141 = vmatpush1.bf16.msra.mxu0 %v3140_v8  ;;  %v3146_v15 = vpack.c.bf16 %v449_v13, %v447_v12  ;;  %v448_v17 = vld [vmem:[#allocation11 + $0x50] sm:$0xff]  ;;  %v451_v18 = vld [vmem:[#allocation11 + $0x68] sm:$0xff]  ;;  %v453_v19 = vld [vmem:[#allocation11 + $0x78] sm:$0xff]  ;;  %3154 = vmatprep.subr.bf16.mxu1 %v3700_v33  ;;  %s3703_s30 = smov 124   ;;  %v3704_v35 = vmov 0   ;;  %vm566_vm6 = vcmask 1031168  }
 0x118   : > { %3143 = vmatprep.subr.bf16.mxu0 %v3142_v9  ;;  %v3148_v20 = vpack.c.bf16 %v448_v17, %v446_v16  ;;  %v3150_v21 = vpack.c.bf16 %v453_v19, %v451_v18  ;;  %v450_v22 = vld [vmem:[#allocation11 + $0x60] sm:$0xff]  ;;  %v452_v23 = vld [vmem:[#allocation11 + $0x70] sm:$0xff]  ;;  %v455_v25 = vld [vmem:[#allocation11 + $0x88] sm:$0x3]  ;;  %3015 = vmatprep.mubr.msk.f32.mxu1 %vm3702_vm5, %v3697_v0  ;;  %vm555_vm7 = vcmask 1039360   ;;  %vm577_vm8 = vcmask 1022976  }
 0x119   : > { %v3152_v24 = vpack.c.bf16 %v452_v23, %v450_v22  ;;  %v454_v26 = vld [vmem:[#allocation11 + $0x80] sm:$0x3]  ;;  %v437_v27 = vld [vmem:[%s4084_s4] sm:$0xf]  ;;  %vm544_vm4 = vmor %vm543_vm3, %vm542_vm2  ;;  %3335 = vset.pattern.permute.xlu0 %v3704_v35  ;;  %vm588_vm9 = vcmask 1014784   ;;  %vm602_vm10 = vcmask 162816  }
 0x11a   : > { %v596_v36 = vld [vmem:[#allocation14] sm:$0xff]  ;;  %v592_v52 = vld [vmem:[#allocation13] sm:$0xff]  ;;  %s4117_s17 = scalar_lea.vmem [#allocation22], %s2919_s2  ;;  %s4393_s8 = sld [smem:[#allocation29_spill]] }
 0x11b   : > { %3145 = vmatpush1.bf16.msra.mxu0 %v3144_v14 }
 0x11c   : > { %3147 = vmatprep.subr.bf16.mxu0 %v3146_v15 }
 0x11f   : > { %3149 = vmatpush1.bf16.msra.mxu0 %v3148_v20 }
 0x120   : > { %3151 = vmatprep.subr.bf16.mxu0 %v3150_v21  ;;  %p2925_p12 = scmp.ne.s32.totalorder %s4393_s8, 0 }
 0x121   : > { %v3705_v60 = vmov (!%p2925_p12), 0.0  }
 0x122   : > { %687 = vst [vmem:[#allocation5] sm:$0xff] (!%p2925_p12), %v3705_v60 }
 0x123   : > { %3153 = vmatpush1.bf16.msra.mxu0 %v3152_v24 }
 0x124   : > { %2920 = vmatprep.subr.msk.mxu0 %vm460_vm0, %v455_v25 }
 0x127   : > { %2921 = vmatpush1.msk.msra.mxu0 %vm460_vm0, %v454_v26 }
 0x128   : > { %2922 = vmatmul.mubr.msk.f32.vlgmr.msra.gmra.mrb[0].mxu0 %vm456_vm1, %v437_v27 }
 0x1fb   : > { %v533_v28 = vpop.f32.mrb[0].mxu0 }
 0x1fc   : > { %v535_v29 = vpop.f32.mrb[1].mxu0 }
 0x1fd   : > { %v540_v30 = vcombine.low %v533_v28, %v535_v29 }
 0x1ff   : > { %545 = vst.msk [vmem:[#allocation2] sm:$0xff] %vm544_vm4, %v540_v30 }
 0x206   : > { %v559_v31 = vld [vmem:[#allocation2] sm:$0xff] }
 0x207   : > { %v546_v32 = vld [vmem:[#allocation2] sm:$0xf]  ;;  %562 = vrot.lane.b32.xlu1 %v559_v31, %s3698_s6  ;;  %551 = vrot.lane.b32.xlu0 %v559_v31, %s3699_s14  ;;  %v561_v34 = vcombine.high %v559_v31, %v559_v31 }
 0x208   : > { %547 = vst [vmem:[#allocation3] sm:$0xf] %v546_v32 }
 0x20b   : > { %564 = vrot.lane.b32.xlu1 %v561_v34, %s3698_s6  ;;  %553 = vrot.lane.b32.xlu0 %v561_v34, %s3699_s14 }
 0x20f   : > { %575 = vrot.lane.b32.xlu1 %v561_v34, %s3701_s15  ;;  %573 = vrot.lane.b32.xlu0 %v559_v31, %s3701_s15 }
 0x213   : > { %586 = vrot.lane.b32.xlu1 %v561_v34, %s3703_s30  ;;  %584 = vrot.lane.b32.xlu0 %v559_v31, %s3703_s30 }
 0x217   : > { %599 = vperm.xlu0 %3335, %v596_v36  }
 0x279   : > { %v563_v37 = vpop.permute.xlu1 %562  ;;  %v552_v38 = vpop.permute.xlu0 %551 }
 0x27d   : > { %v565_v39 = vpop.permute.xlu1 %564  ;;  %v554_v40 = vpop.permute.xlu0 %553 }
 0x27e   : > { %v567_v41 = vsel %vm566_vm6, %v563_v37, %v565_v39  ;;  %v556_v42 = vsel %vm555_vm7, %v552_v38, %v554_v40 }
 0x27f   : > { %569 = vst [vmem:[#allocation3 + $0x8] sm:$0xf] %v567_v41  ;;  %558 = vst [vmem:[#allocation3 + $0x4] sm:$0xf] %v556_v42 }
 0x281   : > { %v576_v43 = vpop.permute.xlu1 %575  ;;  %v574_v44 = vpop.permute.xlu0 %573 }
 0x282   : > { %v578_v45 = vsel %vm577_vm8, %v574_v44, %v576_v43 }
 0x283   : > { %580 = vst [vmem:[#allocation3 + $0xc] sm:$0xf] %v578_v45 }
 0x285   : > { %v587_v46 = vpop.permute.xlu1 %586  ;;  %v585_v47 = vpop.permute.xlu0 %584 }
 0x286   : > { %v589_v48 = vsel %vm588_vm9, %v585_v47, %v587_v46  ;;  %v593_v49 = vld [vmem:[#allocation3] sm:$0xff] }
 0x287   : > { %591 = vst [vmem:[#allocation3 + $0x10] sm:$0xf] %v589_v48 }
 0x28a   : > { %v594_v50 = vld [vmem:[#allocation3 + $0x8] sm:$0xff] }
 0x28b   : > { %v3155_v51 = vpack.c.bf16 %v594_v50, %v593_v49 }
 0x28d   : > { %3156 = vmatpush3.bf16.msra.mxu1 %v3155_v51 }
 0x28e   : > { %3013 = vmatprep.subr.mxu1 %v3697_v0  ;;  %v595_v53 = vld [vmem:[#allocation3 + $0x10] sm:$0xf] }
 0x291   : > { %3014 = vmatpush3.msk.msra.mxu1 %vm542_vm2, %v595_v53 }
 0x292   : > { %3016 = vmatmul.mubr.msk.f32.vlgmr.msra.gmra.mrb[0].mxu1 %vm602_vm10, %v592_v52 }
 0x296   : > { %v600_v54 = vpop.permute.xlu0 %599 }
 0x365   : > { %v675_v55 = vpop.f32.mrb[0].mxu1  ;;  %686 = sbr.rel (%p2925_p12) target bundleno = 876 (0x36c), region = 88 }
 0x366   : > { %v676_v56 = vadd.f32 %v675_v55, %v600_v54  ;;  %v3017_v57 = vpop.f32.mrb[1].mxu1 }
 0x368   : > { %vm679_vm11 = vcmp.gt.f32.partialorder %v676_v56, 0.0  ;;  %v680_v58 = vmul.f32 0.1, %v676_v56 }
 0x36a   : > { %v681_v59 = vsel %vm679_vm11, %v676_v56, %v680_v58 }
 0x36b   : > { %682 = vst [vmem:[#allocation4] sm:$0xff] %v681_v59 }
 0x36c PF: > { %v691_v61 = vld [vmem:[#allocation5] sm:$0xff]  ;;  %3018 = vmatprep.subr.mxu1 %v3697_v0  ;;  %3020 = vmatprep.mubr.msk.f32.mxu1 %vm3702_vm5, %v3697_v0  ;;  %s3706_s5 = smov 6   ;;  %s3707_s13 = smov 5   ;;  %vm701_vm12 = vcmask 39936   ;;  %vm782_vm13 = vcmask 48128   ;;  %vm704_vm14 = vcmask 64512  }
 0x36d   : > { %778 = vrot.lane.b32.xlu1 %v691_v61, %s3706_s5  ;;  %697 = vrot.lane.b32.xlu0 %v691_v61, %s3707_s13  ;;  %s3708_s25 = smov 4   ;;  %s3709_s16 = smov 3   ;;  %v1266_v63 = vld [vmem:[#allocation17] sm:$0xff]  ;;  %vm864_vm15 = vcmask 31744   ;;  %v690_v10 = vld [vmem:[#allocation16] sm:$0xff]  ;;  %vm947_vm0 = vcmask 23552  }
 0x36e   : > { %3033 = vmatprep.subr.mxu0 %v3697_v0  ;;  %3035 = vmatprep.mubr.msk.f32.mxu0 %vm3702_vm5, %v3697_v0  ;;  %s3710_s21 = smov 2   ;;  %s3711_s23 = smov 1   ;;  %v694_v5 = vld [vmem:[#allocation16 + $0x8] sm:$0xff]  ;;  %v859_v14 = vld [vmem:[#allocation16 + $0x10] sm:$0xff]  ;;  %v942_v15 = vld [vmem:[#allocation16 + $0x18] sm:$0xff]  ;;  %vm1030_vm1 = vcmask 15360  }
 0x36f   : > { %3337 = vset.pattern.permute.xlu0 %v3704_v35  ;;  %3338 = vset.pattern.permute.xlu1 %v3704_v35  ;;  %v1025_v19 = vld [vmem:[#allocation16 + $0x20] sm:$0xff]  ;;  %vm1113_vm2 = vcmask 7168   ;;  %v1108_v23 = vld [vmem:[#allocation16 + $0x28] sm:$0xff]  ;;  %v1191_v24 = vld [vmem:[#allocation16 + $0x30] sm:$0xff]  ;;  %v3712_v60 = vmov (!%p2925_p12), 0.0  }
 0x370   : > { %v1277_v26 = vld [vmem:[#allocation20] sm:$0xff]  ;;  %v1276_v51 = vld [vmem:[#allocation19] sm:$0xff]  ;;  %1367 = vst [vmem:[#allocation6] sm:$0xff] (!%p2925_p12), %v3712_v60 }
 0x372   : > { %v4122_v62 = vld [vmem:[#allocation4] sm:$0xff] }
 0x373   : > { %1363 = vst [vmem:[#allocation5] sm:$0xff] %v4122_v62  ;;  %780 = vrot.lane.b32.xlu1 %v4122_v62, %s3706_s5  ;;  %699 = vrot.lane.b32.xlu0 %v4122_v62, %s3707_s13 }
 0x377   : > { %862 = vrot.lane.b32.xlu1 %v4122_v62, %s3708_s25  ;;  %860 = vrot.lane.b32.xlu0 %v691_v61, %s3708_s25 }
 0x37b   : > { %945 = vrot.lane.b32.xlu1 %v4122_v62, %s3709_s16  ;;  %943 = vrot.lane.b32.xlu0 %v691_v61, %s3709_s16 }
 0x37f   : > { %1028 = vrot.lane.b32.xlu1 %v4122_v62, %s3710_s21  ;;  %1026 = vrot.lane.b32.xlu0 %v691_v61, %s3710_s21 }
 0x383   : > { %1111 = vrot.lane.b32.xlu1 %v4122_v62, %s3711_s23  ;;  %1109 = vrot.lane.b32.xlu0 %v691_v61, %s3711_s23 }
 0x387   : > { %1269 = vperm.xlu0 %3337, %v1266_v63   ;;  %1280 = vperm.xlu1 %3338, %v1277_v26  }
 0x3df   : > { %v779_v1 = vpop.permute.xlu1 %778  ;;  %v698_v2 = vpop.permute.xlu0 %697 }
 0x3e5   : > { %v781_v3 = vpop.permute.xlu1 %780  ;;  %v700_v4 = vpop.permute.xlu0 %699 }
 0x3e6   : > { %v702_v6 = vsel %vm701_vm12, %v698_v2, %v700_v4  ;;  %v783_v7 = vsel %vm782_vm13, %v779_v1, %v781_v3 }
 0x3e7   : > { %3019 = vmatpush3.msra.mxu1 %v702_v6 }
 0x3e8   : > { %3021 = vmatmul.mubr.msk.f32.vlgmr.msra.gmra.mrb[2].mxu1 %vm704_vm14, %v694_v5  ;;  %3023 = vmatprep.subr.mxu1 %v3697_v0 }
 0x3e9   : > { %v863_v8 = vpop.permute.xlu1 %862  ;;  %3024 = vmatpush3.msra.mxu1 %v783_v7  ;;  %v861_v9 = vpop.permute.xlu0 %860  ;;  %3025 = vmatprep.mubr.msk.f32.mxu1 %vm3702_vm5, %v3697_v0 }
 0x3ea   : > { %v865_v11 = vsel %vm864_vm15, %v861_v9, %v863_v8  ;;  %3028 = vmatprep.subr.mxu1 %v3697_v0 }
 0x3ec   : > { %3026 = vmatmul.mubr.msk.f32.vlgmr.msra.gmra.mrb[4].mxu1 %vm704_vm14, %v690_v10 }
 0x3ed   : > { %3029 = vmatpush3.msra.mxu1 %v865_v11  ;;  %v946_v12 = vpop.permute.xlu1 %945  ;;  %v944_v13 = vpop.permute.xlu0 %943  ;;  %3030 = vmatprep.mubr.msk.f32.mxu1 %vm3702_vm5, %v3697_v0 }
 0x3ee   : > { %v948_v16 = vsel %vm947_vm0, %v944_v13, %v946_v12  ;;  %3038 = vmatprep.subr.mxu1 %v3697_v0 }
 0x3ef   : > { %3034 = vmatpush3.msra.mxu0 %v948_v16 }
 0x3f0   : > { %3031 = vmatmul.mubr.msk.f32.vlgmr.msra.gmra.mrb[6].mxu1 %vm704_vm14, %v859_v14  ;;  %3036 = vmatmul.mubr.msk.f32.vlgmr.msra.gmra.mrb[2].mxu0 %vm704_vm14, %v942_v15 }
 0x3f1   : > { %v1029_v17 = vpop.permute.xlu1 %1028  ;;  %v1027_v18 = vpop.permute.xlu0 %1026  ;;  %3040 = vmatprep.mubr.msk.f32.mxu1 %vm3702_vm5, %v3697_v0  ;;  %3043 = vmatprep.subr.mxu0 %v3697_v0 }
 0x3f2   : > { %v1031_v20 = vsel %vm1030_vm1, %v1027_v18, %v1029_v17  ;;  %3045 = vmatprep.mubr.msk.f32.mxu0 %vm3702_vm5, %v3697_v0 }
 0x3f3   : > { %3039 = vmatpush3.msra.mxu1 %v1031_v20 }
 0x3f4   : > { %3041 = vmatmul.mubr.msk.f32.vlgmr.msra.gmra.mrb[8].mxu1 %vm704_vm14, %v1025_v19  ;;  %3048 = vmatprep.subr.mxu1 %v3697_v0 }
 0x3f5   : > { %v1112_v21 = vpop.permute.xlu1 %1111  ;;  %v1110_v22 = vpop.permute.xlu0 %1109  ;;  %3049 = vmatpush3.msra.mxu1 %v4122_v62  ;;  %3050 = vmatprep.mubr.msk.f32.mxu1 %vm3702_vm5, %v3697_v0 }
 0x3f6   : > { %v1114_v25 = vsel %vm1113_vm2, %v1110_v22, %v1112_v21 }
 0x3f7   : > { %3044 = vmatpush3.msra.mxu0 %v1114_v25 }
 0x3f8   : > { %3046 = vmatmul.mubr.msk.f32.vlgmr.msra.gmra.mrb[4].mxu0 %vm704_vm14, %v1108_v23  ;;  %3051 = vmatmul.mubr.msk.f32.vlgmr.msra.gmra.mrb[10].mxu1 %vm704_vm14, %v1191_v24 }
 0x3f9   : > { %3053 = vmatprep.subr.mxu0 %v3697_v0  ;;  %3055 = vmatprep.mubr.msk.f32.mxu0 %vm3702_vm5, %v3697_v0 }
 0x406   : > { %v1270_v47 = vpop.permute.xlu0 %1269  ;;  %v1281_v53 = vpop.permute.xlu1 %1280 }
 0x4bb   : > { %v774_v27 = vpop.f32.mrb[2].mxu1 }
 0x4bc   : > { %v3022_v28 = vpop.f32.mrb[3].mxu1 }
 0x4bf   : > { %v854_v29 = vpop.f32.mrb[4].mxu1 }
 0x4c0   : > { %v855_v30 = vadd.f32 %v854_v29, %v774_v27  ;;  %v3027_v31 = vpop.f32.mrb[5].mxu1 }
 0x4c3   : > { %v936_v32 = vpop.f32.mrb[6].mxu1  ;;  %v1019_v33 = vpop.f32.mrb[2].mxu0 }
 0x4c4   : > { %v940_v34 = vadd.f32 %v936_v32, %v855_v30  ;;  %v3032_v36 = vpop.f32.mrb[7].mxu1  ;;  %v3037_v37 = vpop.f32.mrb[3].mxu0 }
 0x4c6   : > { %v1023_v38 = vadd.f32 %v1019_v33, %v940_v34 }
 0x4c7   : > { %v1102_v39 = vpop.f32.mrb[8].mxu1 }
 0x4c8   : > { %v1106_v40 = vadd.f32 %v1102_v39, %v1023_v38  ;;  %v3042_v41 = vpop.f32.mrb[9].mxu1 }
 0x4cb   : > { %v1185_v42 = vpop.f32.mrb[4].mxu0  ;;  %v1261_v43 = vpop.f32.mrb[10].mxu1 }
 0x4cc   : > { %v1189_v44 = vadd.f32 %v1185_v42, %v1106_v40  ;;  %v3047_v45 = vpop.f32.mrb[5].mxu0  ;;  %v3052_v46 = vpop.f32.mrb[11].mxu1 }
 0x4ce   : > { %v1265_v48 = vadd.f32 %v1261_v43, %v1189_v44 }
 0x4d0   : > { %v1272_v49 = vadd.f32 %v1270_v47, %v1265_v48 }
 0x4d2   : > { %vm1273_vm3 = vcmp.gt.f32.partialorder %v1272_v49, 0.0  ;;  %v1274_v50 = vmul.f32 0.1, %v1272_v49 }
 0x4d4   : > { %v1275_v52 = vsel %vm1273_vm3, %v1272_v49, %v1274_v50 }
 0x4d5   : > { %3054 = vmatpush3.msra.mxu0 %v1275_v52 }
 0x4d6   : > { %3056 = vmatmul.mubr.msk.f32.vlgmr.msra.gmra.mrb[6].mxu0 %vm704_vm14, %v1276_v51 }
 0x5a9   : > { %v1352_v54 = vpop.f32.mrb[6].mxu0 }
 0x5aa   : > { %v1353_v55 = vadd.f32 %v1352_v54, %v1281_v53  ;;  %v3057_v56 = vpop.f32.mrb[7].mxu0 }
 0x5ab   : > { %1366 = sbr.rel (%p2925_p12) target bundleno = 1458 (0x5b2), region = 92 }
 0x5ac   : > { %v1357_v57 = vadd.f32 %v1353_v55, %v4122_v62 }
 0x5ae   : > { %vm1358_vm4 = vcmp.gt.f32.partialorder %v1357_v57, 0.0  ;;  %v1359_v58 = vmul.f32 0.1, %v1357_v57 }
 0x5b0   : > { %v1360_v59 = vsel %vm1358_vm4, %v1357_v57, %v1359_v58 }
 0x5b1   : > { %1361 = vst [vmem:[#allocation4] sm:$0xff] %v1360_v59 }
 0x5b2 PF: > { %v1372_v61 = vld [vmem:[#allocation6] sm:$0xff]  ;;  %3058 = vmatprep.subr.mxu1 %v3697_v0  ;;  %3063 = vmatprep.subr.mxu0 %v3697_v0  ;;  %s3713_s22 = smov 15   ;;  %s3714_s3 = smov 18   ;;  %v1945_v62 = vld [vmem:[#allocation17 + $0x8] sm:$0xff]  ;;  %vm1462_vm6 = vcmask 146432   ;;  %vm1382_vm7 = vcmask 121856  }
 0x5b3   : > { %1378 = vrot.lane.b32.xlu0 %v1372_v61, %s3713_s22  ;;  %1458 = vrot.lane.b32.xlu1 %v1372_v61, %s3714_s3  ;;  %s3715_s4 = smov 12   ;;  %s3716_s2 = smov 9   ;;  %v1371_v5 = vld [vmem:[#allocation16 + $0x38] sm:$0xff]  ;;  %vm1544_vm8 = vcmask 97280   ;;  %v1375_v9 = vld [vmem:[#allocation16 + $0x40] sm:$0xff]  ;;  %vm1627_vm9 = vcmask 72704  }
 0x5b4   : > { %3060 = vmatprep.mubr.msk.f32.mxu1 %vm3702_vm5, %v3697_v0  ;;  %3065 = vmatprep.mubr.msk.f32.mxu0 %vm3702_vm5, %v3697_v0  ;;  %v1539_v14 = vld [vmem:[#allocation16 + $0x48] sm:$0xff]  ;;  %v1622_v15 = vld [vmem:[#allocation16 + $0x50] sm:$0xff]  ;;  %v1705_v19 = vld [vmem:[#allocation16 + $0x58] sm:$0xff]  ;;  %v3717_v60 = vmov (!%p2925_p12), 0.0  }
 0x5b5   : > { %3339 = vset.pattern.permute.xlu0 %v3704_v35  ;;  %3340 = vset.pattern.permute.xlu1 %v3704_v35  ;;  %v1787_v23 = vld [vmem:[#allocation16 + $0x60] sm:$0xff]  ;;  %v1869_v24 = vld [vmem:[#allocation16 + $0x68] sm:$0xff]  ;;  %2048 = vst [vmem:[#allocation7] sm:$0xff] (!%p2925_p12), %v3717_v60 }
 0x5b6   : > { %v1958_v26 = vld [vmem:[#allocation20 + $0x8] sm:$0xff]  ;;  %v1956_v51 = vld [vmem:[#allocation19 + $0x8] sm:$0xff] }
 0x5b7   : > { %1540 = vrot.lane.b32.xlu0 %v1372_v61, %s3715_s4 }
 0x5b8   : > { %v4175_v63 = vld [vmem:[#allocation4] sm:$0xff] }
 0x5b9   : > { %2044 = vst [vmem:[#allocation6] sm:$0xff] %v4175_v63  ;;  %1460 = vrot.lane.b32.xlu1 %v4175_v63, %s3714_s3 }
 0x5bb   : > { %1380 = vrot.lane.b32.xlu0 %v4175_v63, %s3713_s22 }
 0x5bd   : > { %1542 = vrot.lane.b32.xlu1 %v4175_v63, %s3715_s4 }
 0x5bf   : > { %1623 = vrot.lane.b32.xlu0 %v1372_v61, %s3716_s2 }
 0x5c1   : > { %1625 = vrot.lane.b32.xlu1 %v4175_v63, %s3716_s2 }
 0x5c3   : > { %1706 = vrot.lane.b32.xlu0 %v1372_v61, %s3706_s5 }
 0x5c5   : > { %1708 = vrot.lane.b32.xlu1 %v4175_v63, %s3706_s5 }
 0x5c7   : > { %1788 = vrot.lane.b32.xlu0 %v1372_v61, %s3709_s16 }
 0x5c9   : > { %1790 = vrot.lane.b32.xlu1 %v4175_v63, %s3709_s16 }
 0x5cb   : > { %1948 = vperm.xlu0 %3339, %v1945_v62  }
 0x5cd   : > { %1961 = vperm.xlu1 %3340, %v1958_v26  }
 0x625   : > { %v1379_v1 = vpop.permute.xlu0 %1378  ;;  %v1459_v2 = vpop.permute.xlu1 %1458 }
 0x629   : > { %v1541_v3 = vpop.permute.xlu0 %1540 }
 0x62b   : > { %v1461_v4 = vpop.permute.xlu1 %1460 }
 0x62c   : > { %v1463_v6 = vsel %vm1462_vm6, %v1459_v2, %v1461_v4 }
 0x62d   : > { %3064 = vmatpush3.msra.mxu0 %v1463_v6  ;;  %v1381_v7 = vpop.permute.xlu0 %1380 }
 0x62e   : > { %3066 = vmatmul.mubr.msk.f32.vlgmr.msra.gmra.mrb[8].mxu0 %vm704_vm14, %v1371_v5  ;;  %3073 = vmatprep.subr.mxu0 %v3697_v0  ;;  %v1383_v10 = vsel %vm1382_vm7, %v1379_v1, %v1381_v7 }
 0x62f   : > { %v1543_v8 = vpop.permute.xlu1 %1542  ;;  %3075 = vmatprep.mubr.msk.f32.mxu0 %vm3702_vm5, %v3697_v0  ;;  %3059 = vmatpush3.msra.mxu1 %v1383_v10 }
 0x630   : > { %v1545_v11 = vsel %vm1544_vm8, %v1541_v3, %v1543_v8  ;;  %3068 = vmatprep.subr.mxu1 %v3697_v0  ;;  %3061 = vmatmul.mubr.msk.f32.vlgmr.msra.gmra.mrb[12].mxu1 %vm704_vm14, %v1375_v9 }
 0x631   : > { %3069 = vmatpush3.msra.mxu1 %v1545_v11  ;;  %v1624_v13 = vpop.permute.xlu0 %1623  ;;  %3070 = vmatprep.mubr.msk.f32.mxu1 %vm3702_vm5, %v3697_v0 }
 0x632   : > { %3078 = vmatprep.subr.mxu1 %v3697_v0 }
 0x633   : > { %v1626_v12 = vpop.permute.xlu1 %1625 }
 0x634   : > { %v1628_v16 = vsel %vm1627_vm9, %v1624_v13, %v1626_v12  ;;  %3071 = vmatmul.mubr.msk.f32.vlgmr.msra.gmra.mrb[14].mxu1 %vm704_vm14, %v1539_v14 }
 0x635   : > { %3074 = vmatpush3.msra.mxu0 %v1628_v16  ;;  %v1707_v18 = vpop.permute.xlu0 %1706  ;;  %3080 = vmatprep.mubr.msk.f32.mxu1 %vm3702_vm5, %v3697_v0 }
 0x636   : > { %3076 = vmatmul.mubr.msk.f32.vlgmr.msra.gmra.mrb[10].mxu0 %vm704_vm14, %v1622_v15  ;;  %3083 = vmatprep.subr.mxu0 %v3697_v0 }
 0x637   : > { %v1709_v17 = vpop.permute.xlu1 %1708  ;;  %3085 = vmatprep.mubr.msk.f32.mxu0 %vm3702_vm5, %v3697_v0 }
 0x638   : > { %v1710_v20 = vsel %vm782_vm13, %v1707_v18, %v1709_v17 }
 0x639   : > { %3079 = vmatpush3.msra.mxu1 %v1710_v20  ;;  %v1789_v22 = vpop.permute.xlu0 %1788 }
 0x63a   : > { %3081 = vmatmul.mubr.msk.f32.vlgmr.msra.gmra.mrb[16].mxu1 %vm704_vm14, %v1705_v19  ;;  %3088 = vmatprep.subr.mxu1 %v3697_v0 }
 0x63b   : > { %v1791_v21 = vpop.permute.xlu1 %1790  ;;  %3089 = vmatpush3.msra.mxu1 %v4175_v63  ;;  %3090 = vmatprep.mubr.msk.f32.mxu1 %vm3702_vm5, %v3697_v0 }
 0x63c   : > { %v1792_v25 = vsel %vm947_vm0, %v1789_v22, %v1791_v21 }
 0x63d   : > { %3084 = vmatpush3.msra.mxu0 %v1792_v25 }
 0x63e   : > { %3086 = vmatmul.mubr.msk.f32.vlgmr.msra.gmra.mrb[12].mxu0 %vm704_vm14, %v1787_v23  ;;  %3091 = vmatmul.mubr.msk.f32.vlgmr.msra.gmra.mrb[18].mxu1 %vm704_vm14, %v1869_v24 }
 0x63f   : > { %3093 = vmatprep.subr.mxu0 %v3697_v0  ;;  %3095 = vmatprep.mubr.msk.f32.mxu0 %vm3702_vm5, %v3697_v0 }
 0x64a   : > { %v1949_v47 = vpop.permute.xlu0 %1948 }
 0x64c   : > { %v1962_v53 = vpop.permute.xlu1 %1961 }
 0x701   : > { %v1534_v27 = vpop.f32.mrb[8].mxu0 }
 0x702   : > { %v3067_v28 = vpop.f32.mrb[9].mxu0 }
 0x703   : > { %v1454_v29 = vpop.f32.mrb[12].mxu1 }
 0x704   : > { %v3062_v30 = vpop.f32.mrb[13].mxu1  ;;  %v1535_v31 = vadd.f32 %v1534_v27, %v1454_v29 }
 0x707   : > { %v1616_v32 = vpop.f32.mrb[14].mxu1 }
 0x708   : > { %v1620_v34 = vadd.f32 %v1616_v32, %v1535_v31  ;;  %v3072_v36 = vpop.f32.mrb[15].mxu1 }
 0x709   : > { %v1699_v33 = vpop.f32.mrb[10].mxu0 }
 0x70a   : > { %v3077_v37 = vpop.f32.mrb[11].mxu0  ;;  %v1703_v38 = vadd.f32 %v1699_v33, %v1620_v34 }
 0x70d   : > { %v1781_v39 = vpop.f32.mrb[16].mxu1 }
 0x70e   : > { %v1785_v40 = vadd.f32 %v1781_v39, %v1703_v38  ;;  %v3082_v41 = vpop.f32.mrb[17].mxu1 }
 0x711   : > { %v1863_v42 = vpop.f32.mrb[12].mxu0  ;;  %v1939_v43 = vpop.f32.mrb[18].mxu1 }
 0x712   : > { %v1867_v44 = vadd.f32 %v1863_v42, %v1785_v40  ;;  %v3087_v45 = vpop.f32.mrb[13].mxu0  ;;  %v3092_v46 = vpop.f32.mrb[19].mxu1 }
 0x714   : > { %v1943_v48 = vadd.f32 %v1939_v43, %v1867_v44 }
 0x716   : > { %v1951_v49 = vadd.f32 %v1949_v47, %v1943_v48 }
 0x718   : > { %vm1952_vm10 = vcmp.gt.f32.partialorder %v1951_v49, 0.0  ;;  %v1953_v50 = vmul.f32 0.1, %v1951_v49 }
 0x71a   : > { %v1954_v52 = vsel %vm1952_vm10, %v1951_v49, %v1953_v50 }
 0x71b   : > { %3094 = vmatpush3.msra.mxu0 %v1954_v52 }
 0x71c   : > { %3096 = vmatmul.mubr.msk.f32.vlgmr.msra.gmra.mrb[14].mxu0 %vm704_vm14, %v1956_v51 }
 0x7ef   : > { %v2033_v54 = vpop.f32.mrb[14].mxu0 }
 0x7f0   : > { %v2034_v55 = vadd.f32 %v2033_v54, %v1962_v53  ;;  %v3097_v56 = vpop.f32.mrb[15].mxu0 }
 0x7f1   : > { %2047 = sbr.rel (%p2925_p12) target bundleno = 2040 (0x7f8), region = 96 }
 0x7f2   : > { %v2038_v57 = vadd.f32 %v2034_v55, %v4175_v63 }
 0x7f4   : > { %vm2039_vm11 = vcmp.gt.f32.partialorder %v2038_v57, 0.0  ;;  %v2040_v58 = vmul.f32 0.1, %v2038_v57 }
 0x7f6   : > { %v2041_v59 = vsel %vm2039_vm11, %v2038_v57, %v2040_v58 }
 0x7f7   : > { %2042 = vst [vmem:[#allocation4] sm:$0xff] %v2041_v59 }
 0x7f8 PF: > { %v2053_v61 = vld [vmem:[#allocation7] sm:$0xff]  ;;  %3098 = vmatprep.subr.mxu1 %v3697_v0  ;;  %3103 = vmatprep.subr.mxu0 %v3697_v0  ;;  %s3718_s14 = smov 45   ;;  %s3719_s15 = smov 54   ;;  %vm2143_vm12 = vcmask 441344   ;;  %v2052_v4 = vld [vmem:[#allocation16 + $0x70] sm:$0xff]  ;;  %vm2063_vm13 = vcmask 367616  }
 0x7f9   : > { %2059 = vrot.lane.b32.xlu0 %v2053_v61, %s3718_s14  ;;  %2139 = vrot.lane.b32.xlu1 %v2053_v61, %s3719_s15  ;;  %s3720_s30 = smov 36   ;;  %s3721_s8 = smov 27   ;;  %vm2225_vm15 = vcmask 293888   ;;  %v2056_v8 = vld [vmem:[#allocation16 + $0x78] sm:$0xff]  ;;  %vm2308_vm0 = vcmask 220160   ;;  %v2220_v13 = vld [vmem:[#allocation16 + $0x80] sm:$0xff] }
 0x7fa   : > { %3100 = vmatprep.mubr.msk.f32.mxu1 %vm3702_vm5, %v3697_v0  ;;  %3105 = vmatprep.mubr.msk.f32.mxu0 %vm3702_vm5, %v3697_v0  ;;  %v2303_v14 = vld [vmem:[#allocation16 + $0x88] sm:$0xff]  ;;  %v2386_v18 = vld [vmem:[#allocation16 + $0x90] sm:$0xff]  ;;  %v2468_v22 = vld [vmem:[#allocation16 + $0x98] sm:$0xff]  ;;  %s4396_s5 = sld [smem:[#allocation30_spill]]  ;;  %s4397_s13 = sld [smem:[#allocation29_spill]] }
 0x7fb   : > { %3341 = vset.pattern.permute.xlu0 %v3704_v35  ;;  %3342 = vset.pattern.permute.xlu1 %v3704_v35  ;;  %v2626_v35 = vld [vmem:[#allocation17 + $0x10] sm:$0xff]  ;;  %v2550_v23 = vld [vmem:[#allocation16 + $0xa0] sm:$0xff]  ;;  %v2639_v25 = vld [vmem:[#allocation20 + $0x10] sm:$0xff]  ;;  %s2744_s23 = sshll.u32 %s4117_s17, 4  ;;  %p4399_p7 = scmp.ne.s32.totalorder %s4388_s20, 0  ;;  %s4293_s23 = int_to_ptr.vmem [resolvable:$true] %s2744_s23 }
 0x7fc   : > { %v2637_v49 = vld [vmem:[#allocation19 + $0x10] sm:$0xff]  ;;  %s3569_s6 = scalar_lea.vmem %s4293_s23, 128 }
 0x7fd   : > { %2221 = vrot.lane.b32.xlu0 %v2053_v61, %s3720_s30  ;;  %p3570_p0 = scmp.ne.s32.totalorder %s4293_s23, %s3569_s6 }
 0x7fe   : > { %v4234_v62 = vld [vmem:[#allocation4] sm:$0xff] }
 0x7ff   : > { %2725 = vst [vmem:[#allocation7] sm:$0xff] %v4234_v62  ;;  %2141 = vrot.lane.b32.xlu1 %v4234_v62, %s3719_s15  ;;  %p3571_p3 = pnand %p3570_p0, %p4399_p7 }
 0x800   : > { %s2953_s25 = sshll.u32 %s4396_s5, 2 }
 0x801   : > { %2061 = vrot.lane.b32.xlu0 %v4234_v62, %s3718_s14  ;;  %s2740_s16 = sadd.s32 %s4397_s13, %s2953_s25  ;;  %p3572_p11 = pneg %p3571_p3 }
 0x802   : > { %s2954_s21 = sshll.u32 %s2740_s16, 7  ;;  %s3722_s14 = smov [#allocation22]  }
 0x803   : > { %2223 = vrot.lane.b32.xlu1 %v4234_v62, %s3720_s30  ;;  %s3573_s15 = sshll.u32 %s3722_s14, 4  ;;  %s3574_s15 = int_to_ptr.vmem [resolvable:$false] %s3573_s15 }
 0x804   : > { %s3575_s30 = scalar_lea.vmem %s3574_s15, 256  ;;  %p3576_p2 = scmp.lt.s32.totalorder %s4293_s23, %s3574_s15 }
 0x805   : > { %2304 = vrot.lane.b32.xlu0 %v2053_v61, %s3721_s8  ;;  %p3577_p4 = scmp.lt.s32.totalorder %s3575_s30, %s3569_s6 }
 0x807   : > { %2306 = vrot.lane.b32.xlu1 %v4234_v62, %s3721_s8  ;;  %p3578_p6 = por %p3577_p4, %p3576_p2 }
 0x809   : > { %2387 = vrot.lane.b32.xlu0 %v2053_v61, %s3714_s3  ;;  %p3579_p5 = pnand %p3578_p6, %p3572_p11 }
 0x80b   : > { %2389 = vrot.lane.b32.xlu1 %v4234_v62, %s3714_s3  ;;  %s4398_s3 = sld [smem:[#allocation37_spill]] }
 0x80d   : > { %2469 = vrot.lane.b32.xlu0 %v2053_v61, %s3716_s2 }
 0x80f   : > { %2471 = vrot.lane.b32.xlu1 %v4234_v62, %s3716_s2  ;;  %s2729_s2 = scalar_lea.sflag [#allocation10], %s4080_s9 }
 0x811   : > { %2629 = vperm.xlu0 %3341, %v2626_v35   ;;  %s4291_s4 = scalar_lea.hbm %s4398_s3, %s2954_s21 }
 0x813   : > { %2642 = vperm.xlu1 %3342, %v2639_v25  }
 0x86b   : > { %v2060_v63 = vpop.permute.xlu0 %2059  ;;  %v2140_v1 = vpop.permute.xlu1 %2139 }
 0x86f   : > { %v2222_v2 = vpop.permute.xlu0 %2221 }
 0x871   : > { %v2142_v3 = vpop.permute.xlu1 %2141 }
 0x872   : > { %v2144_v5 = vsel %vm2143_vm12, %v2140_v1, %v2142_v3 }
 0x873   : > { %3104 = vmatpush3.msra.mxu0 %v2144_v5  ;;  %v2062_v6 = vpop.permute.xlu0 %2061 }
 0x874   : > { %3106 = vmatmul.mubr.msk.f32.vlgmr.msra.gmra.mrb[16].mxu0 %vm704_vm14, %v2052_v4  ;;  %3113 = vmatprep.subr.mxu0 %v3697_v0  ;;  %v2064_v9 = vsel %vm2063_vm13, %v2060_v63, %v2062_v6 }
 0x875   : > { %v2224_v7 = vpop.permute.xlu1 %2223  ;;  %3115 = vmatprep.mubr.msk.f32.mxu0 %vm3702_vm5, %v3697_v0  ;;  %3099 = vmatpush3.msra.mxu1 %v2064_v9 }
 0x876   : > { %v2226_v10 = vsel %vm2225_vm15, %v2222_v2, %v2224_v7  ;;  %3108 = vmatprep.subr.mxu1 %v3697_v0  ;;  %3101 = vmatmul.mubr.msk.f32.vlgmr.msra.gmra.mrb[20].mxu1 %vm704_vm14, %v2056_v8 }
 0x877   : > { %3109 = vmatpush3.msra.mxu1 %v2226_v10  ;;  %v2305_v12 = vpop.permute.xlu0 %2304  ;;  %3110 = vmatprep.mubr.msk.f32.mxu1 %vm3702_vm5, %v3697_v0 }
 0x878   : > { %3118 = vmatprep.subr.mxu1 %v3697_v0 }
 0x879   : > { %v2307_v11 = vpop.permute.xlu1 %2306 }
 0x87a   : > { %v2309_v15 = vsel %vm2308_vm0, %v2305_v12, %v2307_v11  ;;  %3111 = vmatmul.mubr.msk.f32.vlgmr.msra.gmra.mrb[22].mxu1 %vm704_vm14, %v2220_v13 }
 0x87b   : > { %3114 = vmatpush3.msra.mxu0 %v2309_v15  ;;  %v2388_v17 = vpop.permute.xlu0 %2387  ;;  %3120 = vmatprep.mubr.msk.f32.mxu1 %vm3702_vm5, %v3697_v0 }
 0x87c   : > { %3116 = vmatmul.mubr.msk.f32.vlgmr.msra.gmra.mrb[18].mxu0 %vm704_vm14, %v2303_v14  ;;  %3123 = vmatprep.subr.mxu0 %v3697_v0 }
 0x87d   : > { %v2390_v16 = vpop.permute.xlu1 %2389  ;;  %3125 = vmatprep.mubr.msk.f32.mxu0 %vm3702_vm5, %v3697_v0 }
 0x87e   : > { %v2391_v19 = vsel %vm1462_vm6, %v2388_v17, %v2390_v16 }
 0x87f   : > { %3119 = vmatpush3.msra.mxu1 %v2391_v19  ;;  %v2470_v21 = vpop.permute.xlu0 %2469 }
 0x880   : > { %3121 = vmatmul.mubr.msk.f32.vlgmr.msra.gmra.mrb[24].mxu1 %vm704_vm14, %v2386_v18  ;;  %3128 = vmatprep.subr.mxu1 %v3697_v0 }
 0x881   : > { %v2472_v20 = vpop.permute.xlu1 %2471  ;;  %3129 = vmatpush3.msra.mxu1 %v4234_v62  ;;  %3130 = vmatprep.mubr.msk.f32.mxu1 %vm3702_vm5, %v3697_v0 }
 0x882   : > { %v2473_v24 = vsel %vm1627_vm9, %v2470_v21, %v2472_v20 }
 0x883   : > { %3124 = vmatpush3.msra.mxu0 %v2473_v24 }
 0x884   : > { %3126 = vmatmul.mubr.msk.f32.vlgmr.msra.gmra.mrb[20].mxu0 %vm704_vm14, %v2468_v22  ;;  %3131 = vmatmul.mubr.msk.f32.vlgmr.msra.gmra.mrb[26].mxu1 %vm704_vm14, %v2550_v23 }
 0x885   : > { %3133 = vmatprep.subr.mxu0 %v3697_v0  ;;  %3135 = vmatprep.mubr.msk.f32.mxu0 %vm3702_vm5, %v3697_v0 }
 0x890   : > { %v2630_v45 = vpop.permute.xlu0 %2629 }
 0x892   : > { %v2643_v51 = vpop.permute.xlu1 %2642 }
 0x947   : > { %v2215_v26 = vpop.f32.mrb[16].mxu0 }
 0x948   : > { %v3107_v27 = vpop.f32.mrb[17].mxu0 }
 0x949   : > { %v2135_v28 = vpop.f32.mrb[20].mxu1 }
 0x94a   : > { %v3102_v29 = vpop.f32.mrb[21].mxu1  ;;  %v2216_v30 = vadd.f32 %v2215_v26, %v2135_v28 }
 0x94d   : > { %v2297_v31 = vpop.f32.mrb[22].mxu1 }
 0x94e   : > { %v2301_v33 = vadd.f32 %v2297_v31, %v2216_v30  ;;  %v3112_v34 = vpop.f32.mrb[23].mxu1 }
 0x94f   : > { %v2380_v32 = vpop.f32.mrb[18].mxu0 }
 0x950   : > { %v3117_v36 = vpop.f32.mrb[19].mxu0  ;;  %v2384_v37 = vadd.f32 %v2380_v32, %v2301_v33 }
 0x953   : > { %v2462_v38 = vpop.f32.mrb[24].mxu1 }
 0x954   : > { %v2466_v39 = vadd.f32 %v2462_v38, %v2384_v37  ;;  %v3122_v40 = vpop.f32.mrb[25].mxu1 }
 0x957   : > { %v2544_v41 = vpop.f32.mrb[20].mxu0  ;;  %v2620_v42 = vpop.f32.mrb[26].mxu1 }
 0x958   : > { %v2548_v0 = vadd.f32 %v2544_v41, %v2466_v39  ;;  %v3127_v43 = vpop.f32.mrb[21].mxu0  ;;  %v3132_v44 = vpop.f32.mrb[27].mxu1 }
 0x95a   : > { %v2624_v46 = vadd.f32 %v2620_v42, %v2548_v0 }
 0x95c   : > { %v2632_v47 = vadd.f32 %v2630_v45, %v2624_v46 }
 0x95e   : > { %vm2633_vm5 = vcmp.gt.f32.partialorder %v2632_v47, 0.0  ;;  %v2634_v48 = vmul.f32 0.1, %v2632_v47 }
 0x960   : > { %v2635_v50 = vsel %vm2633_vm5, %v2632_v47, %v2634_v48 }
 0x961   : > { %3134 = vmatpush3.msra.mxu0 %v2635_v50 }
 0x962   : > { %3136 = vmatmul.mubr.msk.f32.vlgmr.msra.gmra.mrb[22].mxu0 %vm704_vm14, %v2637_v49 }
 0xa35   : > { %v2714_v52 = vpop.f32.mrb[22].mxu0 }
 0xa36   : > { %v2715_v53 = vadd.f32 %v2714_v52, %v2643_v51  ;;  %v3137_v54 = vpop.f32.mrb[23].mxu0 }
 0xa38   : > { %v2719_v55 = vadd.f32 %v2715_v53, %v4234_v62 }
 0xa3a   : > { %vm2720_vm1 = vcmp.gt.f32.partialorder %v2719_v55, 0.0  ;;  %v2721_v56 = vmul.f32 0.1, %v2719_v55 }
 0xa3c   : > { %v2722_v57 = vsel %vm2720_vm1, %v2719_v55, %v2721_v56 }
 0xa3d   : > { %2723 = vst [vmem:[#allocation4] sm:$0xff] %v2722_v57  ;;  %2727 = vst [vmem:[%s4117_s17] sm:$0xff] %v2722_v57 }
 0xa3e   : > { %3582 = shalt.err (!%p3579_p5)
}
 0xa3f   : > { %s3583_s9 = scalar_lea.hbm %s4291_s4, 128  ;;  %s3587_s5 = scalar_lea.hbm %s4398_s3, 1024 }
 0xa40   : > { %p3584_p1 = scmp.ne.s32.totalorder %s4291_s4, %s3583_s9  ;;  %p3588_p8 = scmp.lt.u32.totalorder %s4291_s4, %s4398_s3 }
 0xa41   : > { %p3589_p13 = scmp.lt.u32.totalorder %s3587_s5, %s3583_s9  ;;  %p3591_p0 = scmp.lt.u32.totalorder %s3583_s9, %s4291_s4 }
 0xa42   : > { %p3585_p9 = pnand %p3584_p1, %p4399_p7 }
 0xa43   : > { %p3590_p12 = por %p3589_p13, %p3588_p8 }
 0xa44   : > { %p3586_p10 = pneg %p3585_p9 }
 0xa45   : > { %p3592_p3 = por %p3591_p0, %p3590_p12 }
 0xa47   : > { %p3593_p11 = pnand %p3592_p3, %p3586_p10 }
 0xa49   : > { %3596 = shalt.err (!%p3593_p11)
}
 0xa4a   : > { %3187 = dma.vmem_to_hbm [thread:$0]  (%p4399_p7), %s4293_s23, 128, %s4291_s4, %s2729_s2  }
 0xa4b PF: > { %p3234_p2 = scmp.ge.s32.totalorder %s3683_s12, 2  ;;  %s2756_s16 = sand.u32 1, %s3655_s27  }
 0xa4c   : > { %p4400_p4 = scmp.ne.s32.totalorder %s4389_s24, 0  ;;  %s2757_s21 = scalar_lea.sflag [#allocation10], %s2756_s16 }
 0xa4e   : > { %p3216_p6 = pnand %p3234_p2, %p4400_p4 }
 0xa50   : > { %3650 = dma.done.wait (!%p3216_p6), %s2757_s21, 128  }
 0xa51   : > { %3652 = vsyncadd (!%p3216_p6), %s2757_s21, 4294967168  ;;  %s28_s12 = sadd.s32 1, %s3683_s12   ;;  %s4401_s27 = smov %s3659_s28 }
 0xa52   : > { %p25_p5 = scmp.ge.s32.totalorder %s28_s12, 10   ;;  %s4402_s28 = smov %s3663_s29 }
 0xa53   : > { %s4403_s29 = smov %s4035_s1  ;;  %s4404_s30 = smov %s3675_s10 }
 0xa54   : > { %s4405_s9 = smov %s3679_s11  ;;  %s4406_s10 = smov %s4409_s26 }
 0xa55   : > { %s4407_s11 = smov %s4413_s19  ;;  %27 = sbr.rel (!%p25_p5) target bundleno = 19 (0x13), region = 163 }
 0xa5c   :  { %2762 = vsyncpa [#allocation9], 1 }
 0xa5d   :  { %2764 = vsyncpa [#allocation9 + $0x1], 1 }
 0xa5e   :  { %2765 = vsyncpa [#allocation12], 1 }
 0xa5f   :  { %2766 = vsyncpa [#allocation15], 1 }
 0xa60   :  { %2767 = vsyncpa [#allocation18], 1 }
 0xa61   :  { %2768 = vsyncpa [#allocation21], 1 }
 0xa62   :  { %2769 = vsyncpa [#allocation10], 1 }
 0xa63   :  { %2771 = vsyncpa [#allocation10 + $0x1], 1 }

</bundles_post_ra>
